<compile_context>
chip_gen: v7x
topology: tpu7x:2x2x1
jax: 0.10.0
libtpu: 0.0.40
codegen_flags: <defaults>
</compile_context>

<pallas_src>
import functools
import math

import jax
import jax.numpy as jnp
from jax.experimental import pallas as pl
from jax.experimental.pallas import tpu as pltpu  # noqa: F401  (TPU backend assumed)

# ---------------- small synthetic BERT config ----------------
VOCAB = 64
TYPE_VOCAB = 2
MAX_POS = 16
HIDDEN = 32
NUM_HEADS = 4
HEAD_DIM = HIDDEN // NUM_HEADS
INTERMEDIATE = 64
NUM_LAYERS = 2
BATCH = 2
SEQ = 8
LN_EPS = 1e-12


# ---------------- shared math helpers (usable inside kernels) ----------------
def _layernorm(x, g, b, eps=LN_EPS):
    mu = jnp.mean(x, axis=-1, keepdims=True)
    var = jnp.mean((x - mu) ** 2, axis=-1, keepdims=True)
    return (x - mu) * jax.lax.rsqrt(var + eps) * g + b


def _gelu(x):
    # TODO(synk): HF BERT uses exact erf-GELU; tanh approximation used here
    # (erf has no guaranteed Mosaic lowering).
    return 0.5 * x * (1.0 + jnp.tanh(0.7978845608028654 * (x + 0.044715 * x * x * x)))


# ---------------- single fused Pallas kernel ----------------
def bert_fused_kernel(emb_ref, bias_ref, hmask_ref, emb_g_ref, emb_b_ref,
                      wqkv_ref, bqkv_ref, wo_ref, bo_ref, ln1g_ref, ln1b_ref,
                      w1_ref, b1_ref, w2_ref, b2_ref, ln2g_ref, ln2b_ref,
                      hw1_ref, hb1_ref, hw2_ref, hb2_ref, hw3_ref, hb3_ref,
                      o_ref, *, num_layers, num_heads, head_dim):
    hidden = num_heads * head_dim
    scale = 1.0 / math.sqrt(head_dim)

    # embeddings LayerNorm; x stays (M, H) f32 and resident in VMEM/vregs.
    x = _layernorm(emb_ref[...], emb_g_ref[...], emb_b_ref[...])   # (M, H)
    bias = bias_ref[...]                                           # (M, M) f32

    for l in range(num_layers):                      # static unroll (2 layers)
        # fused QKV projection: one (M, H) @ (H, 3H) MXU push, bf16 operands.
        qkv = jnp.dot(x.astype(jnp.bfloat16), wqkv_ref[l],
                      preferred_element_type=jnp.float32) + bqkv_ref[l]
        q = qkv[:, 0 * hidden:1 * hidden] * scale    # scale folded in once
        k = qkv[:, 1 * hidden:2 * hidden]
        v = qkv[:, 2 * hidden:3 * hidden]
        kb = k.astype(jnp.bfloat16)

        ctx = jnp.zeros_like(q)                      # (M, H) f32 accumulator
        for h in range(num_heads):                   # static unroll (4 heads)
            hm = hmask_ref[h]                        # (1, H) {0,1} lane mask
            qh = (q * hm).astype(jnp.bfloat16)       # non-head lanes -> exact 0
            vh = (v * hm).astype(jnp.bfloat16)
            # scores over the flattened batch; contracting the full H is exact
            # because the other heads' lanes are exactly zero.  Cross-sequence
            # and padded-key pairs are killed by the precomputed f32 bias.
            s = jax.lax.dot_general(qh, kb, (((1,), (1,)), ((), ())),
                                    preferred_element_type=jnp.float32)  # (M, M)
            s = s + bias
            s = s - jnp.max(s, axis=-1, keepdims=True)
            p = jnp.exp(s)
            attn = p * pl.reciprocal(jnp.sum(p, axis=-1, keepdims=True),
                                     approx=True)
            ctx = ctx + jnp.dot(attn.astype(jnp.bfloat16), vh,
                                preferred_element_type=jnp.float32)

        attn_out = jnp.dot(ctx.astype(jnp.bfloat16), wo_ref[l],
                           preferred_element_type=jnp.float32) + bo_ref[l]
        h1 = _layernorm(x + attn_out, ln1g_ref[l], ln1b_ref[l])

        ff = _gelu(jnp.dot(h1.astype(jnp.bfloat16), w1_ref[l],
                           preferred_element_type=jnp.float32) + b1_ref[l])
        ff = jnp.dot(ff.astype(jnp.bfloat16), w2_ref[l],
                     preferred_element_type=jnp.float32) + b2_ref[l]
        x = _layernorm(h1 + ff, ln2g_ref[l], ln2b_ref[l])

    # Classification head, computed for all M tokens (same MXU cost as doing
    # only the CLS rows at this size); the wrapper slices out the [CLS] rows.
    hh = jnp.maximum(jnp.dot(x.astype(jnp.bfloat16), hw1_ref[...],
                             preferred_element_type=jnp.float32) + hb1_ref[...], 0.0)
    hh = jnp.maximum(jnp.dot(hh.astype(jnp.bfloat16), hw2_ref[...],
                             preferred_element_type=jnp.float32) + hb2_ref[...], 0.0)
    o_ref[...] = jnp.dot(hh.astype(jnp.bfloat16), hw3_ref[...],
                         preferred_element_type=jnp.float32) + hb3_ref[...]


# ---------------- pallas_call wrapper ----------------
def bert_forward(params, input_ids, attention_mask, token_type_ids):
    B, S = input_ids.shape
    M = B * S
    # embedding gather (plain-JAX glue), flattened to (M, H)
    emb = (params['word_emb'][input_ids]
           + params['pos_emb'][:S][None, :, :]
           + params['type_emb'][token_type_ids]).astype(jnp.float32).reshape(M, HIDDEN)

    # combined additive attention bias over the flattened batch:
    # -1e9 for padded keys and for cross-sequence (block-off-diagonal) pairs.
    key_ok = attention_mask.reshape(M) > 0
    seq_id = jnp.arange(M, dtype=jnp.int32) // S
    same_seq = seq_id[:, None] == seq_id[None, :]
    bias2d = jnp.where(same_seq & key_ok[None, :], 0.0, -1e9).astype(jnp.float32)

    # {0,1} lane mask selecting each head's slice of the hidden dimension
    head_mask = (jnp.arange(HIDDEN, dtype=jnp.int32)[None, None, :] // HEAD_DIM
                 == jnp.arange(NUM_HEADS, dtype=jnp.int32)[:, None, None]
                 ).astype(jnp.float32)                           # (NH, 1, H)

    kernel = functools.partial(bert_fused_kernel, num_layers=NUM_LAYERS,
                               num_heads=NUM_HEADS, head_dim=HEAD_DIM)
    out = pl.pallas_call(
        kernel,
        out_shape=jax.ShapeDtypeStruct((M, 2), jnp.float32),
        # no grid: everything (params ~<200 KB + a few KB of activations) fits
        # in VMEM with huge margin on v5e/v6e/v7x; full-array default specs.
    )(emb, bias2d, head_mask,
      params['emb_ln_g'], params['emb_ln_b'],
      params['wqkv'], params['bqkv'], params['wo'], params['bo'],
      params['ln1_g'], params['ln1_b'],
      params['w1'], params['b1'], params['w2'], params['b2'],
      params['ln2_g'], params['ln2_b'],
      params['hw1'], params['hb1'], params['hw2'], params['hb2'],
      params['hw3'], params['hb3'])
    return out.reshape(B, S, 2)[:, 0, :]          # logits at the [CLS] token


# ---------------- parameters ----------------
def init_params(key):
    keys = iter(jax.random.split(key, 16))

    def nrm(shape, dtype=jnp.float32):
        return (0.02 * jax.random.normal(next(keys), shape, jnp.float32)).astype(dtype)

    L, H, I = NUM_LAYERS, HIDDEN, INTERMEDIATE
    return {
        'word_emb': nrm((VOCAB, H)),
        'pos_emb': nrm((MAX_POS, H)),
        'type_emb': nrm((TYPE_VOCAB, H)),
        'emb_ln_g': jnp.ones((1, H), jnp.float32),
        'emb_ln_b': jnp.zeros((1, H), jnp.float32),
        # encoder layers, stacked along a leading layer axis; matmul weights bf16
        'wqkv': nrm((L, H, 3 * H), jnp.bfloat16),
        'bqkv': jnp.zeros((L, 1, 3 * H), jnp.float32),
        'wo': nrm((L, H, H), jnp.bfloat16),
        'bo': jnp.zeros((L, 1, H), jnp.float32),
        'ln1_g': jnp.ones((L, 1, H), jnp.float32),
        'ln1_b': jnp.zeros((L, 1, H), jnp.float32),
        'w1': nrm((L, H, I), jnp.bfloat16),
        'b1': jnp.zeros((L, 1, I), jnp.float32),
        'w2': nrm((L, I, H), jnp.bfloat16),
        'b2': jnp.zeros((L, 1, H), jnp.float32),
        'ln2_g': jnp.ones((L, 1, H), jnp.float32),
        'ln2_b': jnp.zeros((L, 1, H), jnp.float32),
        # 3-output-layer head: H->256, ReLU, 256->256, ReLU, 256->2
        'hw1': nrm((H, 256), jnp.bfloat16), 'hb1': jnp.zeros((1, 256), jnp.float32),
        'hw2': nrm((256, 256), jnp.bfloat16), 'hb2': jnp.zeros((1, 256), jnp.float32),
        'hw3': nrm((256, 2), jnp.bfloat16), 'hb3': jnp.zeros((1, 2), jnp.float32),
    }


# ---------------- pure-JAX reference (mirrors kernel precision) ----------------
def bert_forward_ref(params, input_ids, attention_mask, token_type_ids):
    B, S = input_ids.shape
    x = (params['word_emb'][input_ids]
         + params['pos_emb'][:S][None, :, :]
         + params['type_emb'][token_type_ids]).astype(jnp.float32)
    x = _layernorm(x, params['emb_ln_g'], params['emb_ln_b'])
    bias = (1.0 - attention_mask.astype(jnp.float32)) * -1e9      # (B, S)
    scale = 1.0 / math.sqrt(HEAD_DIM)
    for l in range(NUM_LAYERS):
        qkv = jnp.dot(x.astype(jnp.bfloat16), params['wqkv'][l],
                      preferred_element_type=jnp.float32) + params['bqkv'][l]
        q = qkv[..., :HIDDEN] * scale
        k = qkv[..., HIDDEN:2 * HIDDEN]
        v = qkv[..., 2 * HIDDEN:]
        q = q.reshape(B, S, NUM_HEADS, HEAD_DIM)
        k = k.reshape(B, S, NUM_HEADS, HEAD_DIM)
        v = v.reshape(B, S, NUM_HEADS, HEAD_DIM)
        s = jnp.einsum('bqhd,bkhd->bhqk', q.astype(jnp.bfloat16),
                       k.astype(jnp.bfloat16), preferred_element_type=jnp.float32)
        s = s + bias[:, None, None, :]
        s = s - jnp.max(s, axis=-1, keepdims=True)
        p = jnp.exp(s)
        attn = p / jnp.sum(p, axis=-1, keepdims=True)
        ctx = jnp.einsum('bhqk,bkhd->bqhd', attn.astype(jnp.bfloat16),
                         v.astype(jnp.bfloat16),
                         preferred_element_type=jnp.float32).reshape(B, S, HIDDEN)
        attn_out = jnp.dot(ctx.astype(jnp.bfloat16), params['wo'][l],
                           preferred_element_type=jnp.float32) + params['bo'][l]
        h1 = _layernorm(x + attn_out, params['ln1_g'][l], params['ln1_b'][l])
        ff = _gelu(jnp.dot(h1.astype(jnp.bfloat16), params['w1'][l],
                           preferred_element_type=jnp.float32) + params['b1'][l])
        ff = jnp.dot(ff.astype(jnp.bfloat16), params['w2'][l],
                     preferred_element_type=jnp.float32) + params['b2'][l]
        x = _layernorm(h1 + ff, params['ln2_g'][l], params['ln2_b'][l])
    cls = x[:, 0, :]
    h = jnp.maximum(jnp.dot(cls.astype(jnp.bfloat16), params['hw1'],
                            preferred_element_type=jnp.float32) + params['hb1'], 0.0)
    h = jnp.maximum(jnp.dot(h.astype(jnp.bfloat16), params['hw2'],
                            preferred_element_type=jnp.float32) + params['hb2'], 0.0)
    return jnp.dot(h.astype(jnp.bfloat16), params['hw3'],
                   preferred_element_type=jnp.float32) + params['hb3']


# ---------------- main ----------------
if __name__ == "__main__":
    key = jax.random.PRNGKey(0)
    pkey, ikey = jax.random.split(key)
    params = init_params(pkey)

    input_ids = jax.random.randint(ikey, (BATCH, SEQ), 0, VOCAB, dtype=jnp.int32)
    attention_mask = jnp.array(
        [[1, 1, 1, 1, 1, 1, 1, 1],
         [1, 1, 1, 1, 1, 0, 0, 0]], dtype=jnp.int32)
    token_type_ids = jnp.array(
        [[0, 0, 0, 0, 1, 1, 1, 1],
         [0, 0, 0, 1, 1, 0, 0, 0]], dtype=jnp.int32)

    logits = jax.jit(bert_forward)(params, input_ids, attention_mask, token_type_ids)
    logits = jax.block_until_ready(logits)

    ref = bert_forward_ref(params, input_ids, attention_mask, token_type_ids)
    assert logits.shape == (BATCH, 2)
    assert jnp.allclose(logits, ref, atol=2e-4, rtol=2e-2), (logits, ref)

    print("KERNEL_OK")
</pallas_src>

<mosaic_0001>
module attributes {stable_mosaic.version = 11 : i64} {
  func.func @bert_fused_kernel(%arg0: memref<16x32xf32, #tpu.memory_space<vmem>>, %arg1: memref<16x16xf32, #tpu.memory_space<vmem>>, %arg2: memref<4x1x32xf32, #tpu.memory_space<vmem>>, %arg3: memref<1x32xf32, #tpu.memory_space<vmem>>, %arg4: memref<1x32xf32, #tpu.memory_space<vmem>>, %arg5: memref<2x32x96xbf16, #tpu.memory_space<vmem>>, %arg6: memref<2x1x96xf32, #tpu.memory_space<vmem>>, %arg7: memref<2x32x32xbf16, #tpu.memory_space<vmem>>, %arg8: memref<2x1x32xf32, #tpu.memory_space<vmem>>, %arg9: memref<2x1x32xf32, #tpu.memory_space<vmem>>, %arg10: memref<2x1x32xf32, #tpu.memory_space<vmem>>, %arg11: memref<2x32x64xbf16, #tpu.memory_space<vmem>>, %arg12: memref<2x1x64xf32, #tpu.memory_space<vmem>>, %arg13: memref<2x64x32xbf16, #tpu.memory_space<vmem>>, %arg14: memref<2x1x32xf32, #tpu.memory_space<vmem>>, %arg15: memref<2x1x32xf32, #tpu.memory_space<vmem>>, %arg16: memref<2x1x32xf32, #tpu.memory_space<vmem>>, %arg17: memref<32x256xbf16, #tpu.memory_space<vmem>>, %arg18: memref<1x256xf32, #tpu.memory_space<vmem>>, %arg19: memref<256x256xbf16, #tpu.memory_space<vmem>>, %arg20: memref<1x256xf32, #tpu.memory_space<vmem>>, %arg21: memref<256x2xbf16, #tpu.memory_space<vmem>>, %arg22: memref<1x2xf32, #tpu.memory_space<vmem>>, %arg23: memref<16x2xf32, #tpu.memory_space<vmem>>) attributes {dimension_semantics = [], scalar_prefetch = 0 : i64, scratch_operands = 0 : i64, tpu.core_type = #tpu.core_type<tc>} {
    %c0 = arith.constant 0 : index
    %c0_0 = arith.constant 0 : index
    %0 = vector.load %arg0[%c0, %c0_0] : memref<16x32xf32, #tpu.memory_space<vmem>>, vector<16x32xf32>
    %c0_1 = arith.constant 0 : index
    %c0_2 = arith.constant 0 : index
    %1 = vector.load %arg3[%c0_1, %c0_2] : memref<1x32xf32, #tpu.memory_space<vmem>>, vector<1x32xf32>
    %c0_3 = arith.constant 0 : index
    %c0_4 = arith.constant 0 : index
    %2 = vector.load %arg4[%c0_3, %c0_4] : memref<1x32xf32, #tpu.memory_space<vmem>>, vector<1x32xf32>
    %cst = arith.constant dense<0.000000e+00> : vector<16xf32>
    %3 = vector.multi_reduction <add>, %0, %cst [1] : vector<16x32xf32> to vector<16xf32>
    %4 = vector.shape_cast %3 : vector<16xf32> to vector<16x1xf32>
    %cst_5 = arith.constant 3.200000e+01 : f32
    %5 = vector.broadcast %cst_5 : f32 to vector<16x1xf32>
    %6 = arith.divf %4, %5 : vector<16x1xf32>
    %7 = vector.broadcast %6 : vector<16x1xf32> to vector<16x32xf32>
    %8 = arith.subf %0, %7 : vector<16x32xf32>
    %9 = arith.mulf %8, %8 : vector<16x32xf32>
    %cst_6 = arith.constant dense<0.000000e+00> : vector<16xf32>
    %10 = vector.multi_reduction <add>, %9, %cst_6 [1] : vector<16x32xf32> to vector<16xf32>
    %11 = vector.shape_cast %10 : vector<16xf32> to vector<16x1xf32>
    %cst_7 = arith.constant 3.200000e+01 : f32
    %12 = vector.broadcast %cst_7 : f32 to vector<16x1xf32>
    %13 = arith.divf %11, %12 : vector<16x1xf32>
    %14 = vector.broadcast %6 : vector<16x1xf32> to vector<16x32xf32>
    %15 = arith.subf %0, %14 : vector<16x32xf32>
    %cst_8 = arith.constant 9.99999996E-13 : f32
    %16 = vector.broadcast %cst_8 : f32 to vector<16x1xf32>
    %17 = arith.addf %13, %16 : vector<16x1xf32>
    %18 = math.rsqrt %17 : vector<16x1xf32>
    %19 = vector.broadcast %18 : vector<16x1xf32> to vector<16x32xf32>
    %20 = arith.mulf %15, %19 : vector<16x32xf32>
    %21 = vector.broadcast %1 : vector<1x32xf32> to vector<16x32xf32>
    %22 = arith.mulf %20, %21 : vector<16x32xf32>
    %23 = vector.broadcast %2 : vector<1x32xf32> to vector<16x32xf32>
    %24 = arith.addf %22, %23 : vector<16x32xf32>
    %c0_9 = arith.constant 0 : index
    %c0_10 = arith.constant 0 : index
    %25 = vector.load %arg1[%c0_9, %c0_10] : memref<16x16xf32, #tpu.memory_space<vmem>>, vector<16x16xf32>
    %26 = arith.truncf %24 : vector<16x32xf32> to vector<16x32xbf16>
    %c0_11 = arith.constant 0 : index
    %c0_12 = arith.constant 0 : index
    %c0_13 = arith.constant 0 : index
    %27 = vector.load %arg5[%c0_11, %c0_12, %c0_13] : memref<2x32x96xbf16, #tpu.memory_space<vmem>>, vector<1x32x96xbf16>
    %28 = vector.shape_cast %27 : vector<1x32x96xbf16> to vector<32x96xbf16>
    %cst_14 = arith.constant dense<0.000000e+00> : vector<16x96xf32>
    %29 = tpu.matmul %26, %28, %cst_14 {dimension_numbers = #tpu.dot_dimension_numbers<[1], [0], [0], [1], [0, 0, 1, 1], [], []>} : vector<16x32xbf16>, vector<32x96xbf16>, vector<16x96xf32> -> vector<16x96xf32>
    %c0_15 = arith.constant 0 : index
    %c0_16 = arith.constant 0 : index
    %c0_17 = arith.constant 0 : index
    %30 = vector.load %arg6[%c0_15, %c0_16, %c0_17] : memref<2x1x96xf32, #tpu.memory_space<vmem>>, vector<1x1x96xf32>
    %31 = vector.shape_cast %30 : vector<1x1x96xf32> to vector<1x96xf32>
    %32 = vector.broadcast %31 : vector<1x96xf32> to vector<16x96xf32>
    %33 = arith.addf %29, %32 : vector<16x96xf32>
    %34 = vector.extract_strided_slice %33 {offsets = [0, 0], sizes = [16, 32], strides = [1, 1]} : vector<16x96xf32> to vector<16x32xf32>
    %cst_18 = arith.constant 0.353553385 : f32
    %35 = vector.broadcast %cst_18 : f32 to vector<16x32xf32>
    %36 = arith.mulf %34, %35 : vector<16x32xf32>
    %37 = vector.extract_strided_slice %33 {offsets = [0, 32], sizes = [16, 32], strides = [1, 1]} : vector<16x96xf32> to vector<16x32xf32>
    %38 = vector.extract_strided_slice %33 {offsets = [0, 64], sizes = [16, 32], strides = [1, 1]} : vector<16x96xf32> to vector<16x32xf32>
    %39 = arith.truncf %37 : vector<16x32xf32> to vector<16x32xbf16>
    %cst_19 = arith.constant 0.000000e+00 : f32
    %40 = vector.broadcast %cst_19 : f32 to vector<16x32xf32>
    %c0_20 = arith.constant 0 : index
    %c0_21 = arith.constant 0 : index
    %c0_22 = arith.constant 0 : index
    %41 = vector.load %arg2[%c0_20, %c0_21, %c0_22] : memref<4x1x32xf32, #tpu.memory_space<vmem>>, vector<1x1x32xf32>
    %42 = vector.shape_cast %41 : vector<1x1x32xf32> to vector<1x32xf32>
    %43 = vector.broadcast %42 : vector<1x32xf32> to vector<16x32xf32>
    %44 = arith.mulf %36, %43 : vector<16x32xf32>
    %45 = arith.truncf %44 : vector<16x32xf32> to vector<16x32xbf16>
    %46 = vector.broadcast %42 : vector<1x32xf32> to vector<16x32xf32>
    %47 = arith.mulf %38, %46 : vector<16x32xf32>
    %48 = arith.truncf %47 : vector<16x32xf32> to vector<16x32xbf16>
    %cst_23 = arith.constant dense<0.000000e+00> : vector<16x16xf32>
    %49 = tpu.matmul %45, %39, %cst_23 {dimension_numbers = #tpu.dot_dimension_numbers<[1], [1], [0], [0], [0, 0, 1, 0], [], []>} : vector<16x32xbf16>, vector<16x32xbf16>, vector<16x16xf32> -> vector<16x16xf32>
    %50 = arith.addf %49, %25 : vector<16x16xf32>
    %cst_24 = arith.constant dense<0xFF800000> : vector<16xf32>
    %51 = vector.multi_reduction <maximumf>, %50, %cst_24 [1] : vector<16x16xf32> to vector<16xf32>
    %52 = vector.shape_cast %51 : vector<16xf32> to vector<16x1xf32>
    %53 = vector.broadcast %52 : vector<16x1xf32> to vector<16x16xf32>
    %54 = arith.subf %50, %53 : vector<16x16xf32>
    %55 = math.exp %54 : vector<16x16xf32>
    %cst_25 = arith.constant dense<0.000000e+00> : vector<16xf32>
    %56 = vector.multi_reduction <add>, %55, %cst_25 [1] : vector<16x16xf32> to vector<16xf32>
    %57 = vector.shape_cast %56 : vector<16xf32> to vector<16x1xf32>
    %58 = tpu.reciprocal %57 {approx = true} : vector<16x1xf32> -> vector<16x1xf32>
    %59 = vector.broadcast %58 : vector<16x1xf32> to vector<16x16xf32>
    %60 = arith.mulf %55, %59 : vector<16x16xf32>
    %61 = arith.truncf %60 : vector<16x16xf32> to vector<16x16xbf16>
    %cst_26 = arith.constant dense<0.000000e+00> : vector<16x32xf32>
    %62 = tpu.matmul %61, %48, %cst_26 {dimension_numbers = #tpu.dot_dimension_numbers<[1], [0], [0], [1], [0, 0, 1, 1], [], []>} : vector<16x16xbf16>, vector<16x32xbf16>, vector<16x32xf32> -> vector<16x32xf32>
    %63 = arith.addf %40, %62 : vector<16x32xf32>
    %c1 = arith.constant 1 : index
    %c0_27 = arith.constant 0 : index
    %c0_28 = arith.constant 0 : index
    %64 = vector.load %arg2[%c1, %c0_27, %c0_28] : memref<4x1x32xf32, #tpu.memory_space<vmem>>, vector<1x1x32xf32>
    %65 = vector.shape_cast %64 : vector<1x1x32xf32> to vector<1x32xf32>
    %66 = vector.broadcast %65 : vector<1x32xf32> to vector<16x32xf32>
    %67 = arith.mulf %36, %66 : vector<16x32xf32>
    %68 = arith.truncf %67 : vector<16x32xf32> to vector<16x32xbf16>
    %69 = vector.broadcast %65 : vector<1x32xf32> to vector<16x32xf32>
    %70 = arith.mulf %38, %69 : vector<16x32xf32>
    %71 = arith.truncf %70 : vector<16x32xf32> to vector<16x32xbf16>
    %cst_29 = arith.constant dense<0.000000e+00> : vector<16x16xf32>
    %72 = tpu.matmul %68, %39, %cst_29 {dimension_numbers = #tpu.dot_dimension_numbers<[1], [1], [0], [0], [0, 0, 1, 0], [], []>} : vector<16x32xbf16>, vector<16x32xbf16>, vector<16x16xf32> -> vector<16x16xf32>
    %73 = arith.addf %72, %25 : vector<16x16xf32>
    %cst_30 = arith.constant dense<0xFF800000> : vector<16xf32>
    %74 = vector.multi_reduction <maximumf>, %73, %cst_30 [1] : vector<16x16xf32> to vector<16xf32>
    %75 = vector.shape_cast %74 : vector<16xf32> to vector<16x1xf32>
    %76 = vector.broadcast %75 : vector<16x1xf32> to vector<16x16xf32>
    %77 = arith.subf %73, %76 : vector<16x16xf32>
    %78 = math.exp %77 : vector<16x16xf32>
    %cst_31 = arith.constant dense<0.000000e+00> : vector<16xf32>
    %79 = vector.multi_reduction <add>, %78, %cst_31 [1] : vector<16x16xf32> to vector<16xf32>
    %80 = vector.shape_cast %79 : vector<16xf32> to vector<16x1xf32>
    %81 = tpu.reciprocal %80 {approx = true} : vector<16x1xf32> -> vector<16x1xf32>
    %82 = vector.broadcast %81 : vector<16x1xf32> to vector<16x16xf32>
    %83 = arith.mulf %78, %82 : vector<16x16xf32>
    %84 = arith.truncf %83 : vector<16x16xf32> to vector<16x16xbf16>
    %cst_32 = arith.constant dense<0.000000e+00> : vector<16x32xf32>
    %85 = tpu.matmul %84, %71, %cst_32 {dimension_numbers = #tpu.dot_dimension_numbers<[1], [0], [0], [1], [0, 0, 1, 1], [], []>} : vector<16x16xbf16>, vector<16x32xbf16>, vector<16x32xf32> -> vector<16x32xf32>
    %86 = arith.addf %63, %85 : vector<16x32xf32>
    %c2 = arith.constant 2 : index
    %c0_33 = arith.constant 0 : index
    %c0_34 = arith.constant 0 : index
    %87 = vector.load %arg2[%c2, %c0_33, %c0_34] : memref<4x1x32xf32, #tpu.memory_space<vmem>>, vector<1x1x32xf32>
    %88 = vector.shape_cast %87 : vector<1x1x32xf32> to vector<1x32xf32>
    %89 = vector.broadcast %88 : vector<1x32xf32> to vector<16x32xf32>
    %90 = arith.mulf %36, %89 : vector<16x32xf32>
    %91 = arith.truncf %90 : vector<16x32xf32> to vector<16x32xbf16>
    %92 = vector.broadcast %88 : vector<1x32xf32> to vector<16x32xf32>
    %93 = arith.mulf %38, %92 : vector<16x32xf32>
    %94 = arith.truncf %93 : vector<16x32xf32> to vector<16x32xbf16>
    %cst_35 = arith.constant dense<0.000000e+00> : vector<16x16xf32>
    %95 = tpu.matmul %91, %39, %cst_35 {dimension_numbers = #tpu.dot_dimension_numbers<[1], [1], [0], [0], [0, 0, 1, 0], [], []>} : vector<16x32xbf16>, vector<16x32xbf16>, vector<16x16xf32> -> vector<16x16xf32>
    %96 = arith.addf %95, %25 : vector<16x16xf32>
    %cst_36 = arith.constant dense<0xFF800000> : vector<16xf32>
    %97 = vector.multi_reduction <maximumf>, %96, %cst_36 [1] : vector<16x16xf32> to vector<16xf32>
    %98 = vector.shape_cast %97 : vector<16xf32> to vector<16x1xf32>
    %99 = vector.broadcast %98 : vector<16x1xf32> to vector<16x16xf32>
    %100 = arith.subf %96, %99 : vector<16x16xf32>
    %101 = math.exp %100 : vector<16x16xf32>
    %cst_37 = arith.constant dense<0.000000e+00> : vector<16xf32>
    %102 = vector.multi_reduction <add>, %101, %cst_37 [1] : vector<16x16xf32> to vector<16xf32>
    %103 = vector.shape_cast %102 : vector<16xf32> to vector<16x1xf32>
    %104 = tpu.reciprocal %103 {approx = true} : vector<16x1xf32> -> vector<16x1xf32>
    %105 = vector.broadcast %104 : vector<16x1xf32> to vector<16x16xf32>
    %106 = arith.mulf %101, %105 : vector<16x16xf32>
    %107 = arith.truncf %106 : vector<16x16xf32> to vector<16x16xbf16>
    %cst_38 = arith.constant dense<0.000000e+00> : vector<16x32xf32>
    %108 = tpu.matmul %107, %94, %cst_38 {dimension_numbers = #tpu.dot_dimension_numbers<[1], [0], [0], [1], [0, 0, 1, 1], [], []>} : vector<16x16xbf16>, vector<16x32xbf16>, vector<16x32xf32> -> vector<16x32xf32>
    %109 = arith.addf %86, %108 : vector<16x32xf32>
    %c3 = arith.constant 3 : index
    %c0_39 = arith.constant 0 : index
    %c0_40 = arith.constant 0 : index
    %110 = vector.load %arg2[%c3, %c0_39, %c0_40] : memref<4x1x32xf32, #tpu.memory_space<vmem>>, vector<1x1x32xf32>
    %111 = vector.shape_cast %110 : vector<1x1x32xf32> to vector<1x32xf32>
    %112 = vector.broadcast %111 : vector<1x32xf32> to vector<16x32xf32>
    %113 = arith.mulf %36, %112 : vector<16x32xf32>
    %114 = arith.truncf %113 : vector<16x32xf32> to vector<16x32xbf16>
    %115 = vector.broadcast %111 : vector<1x32xf32> to vector<16x32xf32>
    %116 = arith.mulf %38, %115 : vector<16x32xf32>
    %117 = arith.truncf %116 : vector<16x32xf32> to vector<16x32xbf16>
    %cst_41 = arith.constant dense<0.000000e+00> : vector<16x16xf32>
    %118 = tpu.matmul %114, %39, %cst_41 {dimension_numbers = #tpu.dot_dimension_numbers<[1], [1], [0], [0], [0, 0, 1, 0], [], []>} : vector<16x32xbf16>, vector<16x32xbf16>, vector<16x16xf32> -> vector<16x16xf32>
    %119 = arith.addf %118, %25 : vector<16x16xf32>
    %cst_42 = arith.constant dense<0xFF800000> : vector<16xf32>
    %120 = vector.multi_reduction <maximumf>, %119, %cst_42 [1] : vector<16x16xf32> to vector<16xf32>
    %121 = vector.shape_cast %120 : vector<16xf32> to vector<16x1xf32>
    %122 = vector.broadcast %121 : vector<16x1xf32> to vector<16x16xf32>
    %123 = arith.subf %119, %122 : vector<16x16xf32>
    %124 = math.exp %123 : vector<16x16xf32>
    %cst_43 = arith.constant dense<0.000000e+00> : vector<16xf32>
    %125 = vector.multi_reduction <add>, %124, %cst_43 [1] : vector<16x16xf32> to vector<16xf32>
    %126 = vector.shape_cast %125 : vector<16xf32> to vector<16x1xf32>
    %127 = tpu.reciprocal %126 {approx = true} : vector<16x1xf32> -> vector<16x1xf32>
    %128 = vector.broadcast %127 : vector<16x1xf32> to vector<16x16xf32>
    %129 = arith.mulf %124, %128 : vector<16x16xf32>
    %130 = arith.truncf %129 : vector<16x16xf32> to vector<16x16xbf16>
    %cst_44 = arith.constant dense<0.000000e+00> : vector<16x32xf32>
    %131 = tpu.matmul %130, %117, %cst_44 {dimension_numbers = #tpu.dot_dimension_numbers<[1], [0], [0], [1], [0, 0, 1, 1], [], []>} : vector<16x16xbf16>, vector<16x32xbf16>, vector<16x32xf32> -> vector<16x32xf32>
    %132 = arith.addf %109, %131 : vector<16x32xf32>
    %133 = arith.truncf %132 : vector<16x32xf32> to vector<16x32xbf16>
    %c0_45 = arith.constant 0 : index
    %c0_46 = arith.constant 0 : index
    %c0_47 = arith.constant 0 : index
    %134 = vector.load %arg7[%c0_45, %c0_46, %c0_47] : memref<2x32x32xbf16, #tpu.memory_space<vmem>>, vector<1x32x32xbf16>
    %135 = vector.shape_cast %134 : vector<1x32x32xbf16> to vector<32x32xbf16>
    %cst_48 = arith.constant dense<0.000000e+00> : vector<16x32xf32>
    %136 = tpu.matmul %133, %135, %cst_48 {dimension_numbers = #tpu.dot_dimension_numbers<[1], [0], [0], [1], [0, 0, 1, 1], [], []>} : vector<16x32xbf16>, vector<32x32xbf16>, vector<16x32xf32> -> vector<16x32xf32>
    %c0_49 = arith.constant 0 : index
    %c0_50 = arith.constant 0 : index
    %c0_51 = arith.constant 0 : index
    %137 = vector.load %arg8[%c0_49, %c0_50, %c0_51] : memref<2x1x32xf32, #tpu.memory_space<vmem>>, vector<1x1x32xf32>
    %138 = vector.shape_cast %137 : vector<1x1x32xf32> to vector<1x32xf32>
    %139 = vector.broadcast %138 : vector<1x32xf32> to vector<16x32xf32>
    %140 = arith.addf %136, %139 : vector<16x32xf32>
    %141 = arith.addf %24, %140 : vector<16x32xf32>
    %c0_52 = arith.constant 0 : index
    %c0_53 = arith.constant 0 : index
    %c0_54 = arith.constant 0 : index
    %142 = vector.load %arg9[%c0_52, %c0_53, %c0_54] : memref<2x1x32xf32, #tpu.memory_space<vmem>>, vector<1x1x32xf32>
    %143 = vector.shape_cast %142 : vector<1x1x32xf32> to vector<1x32xf32>
    %c0_55 = arith.constant 0 : index
    %c0_56 = arith.constant 0 : index
    %c0_57 = arith.constant 0 : index
    %144 = vector.load %arg10[%c0_55, %c0_56, %c0_57] : memref<2x1x32xf32, #tpu.memory_space<vmem>>, vector<1x1x32xf32>
    %145 = vector.shape_cast %144 : vector<1x1x32xf32> to vector<1x32xf32>
    %cst_58 = arith.constant dense<0.000000e+00> : vector<16xf32>
    %146 = vector.multi_reduction <add>, %141, %cst_58 [1] : vector<16x32xf32> to vector<16xf32>
    %147 = vector.shape_cast %146 : vector<16xf32> to vector<16x1xf32>
    %cst_59 = arith.constant 3.200000e+01 : f32
    %148 = vector.broadcast %cst_59 : f32 to vector<16x1xf32>
    %149 = arith.divf %147, %148 : vector<16x1xf32>
    %150 = vector.broadcast %149 : vector<16x1xf32> to vector<16x32xf32>
    %151 = arith.subf %141, %150 : vector<16x32xf32>
    %152 = arith.mulf %151, %151 : vector<16x32xf32>
    %cst_60 = arith.constant dense<0.000000e+00> : vector<16xf32>
    %153 = vector.multi_reduction <add>, %152, %cst_60 [1] : vector<16x32xf32> to vector<16xf32>
    %154 = vector.shape_cast %153 : vector<16xf32> to vector<16x1xf32>
    %cst_61 = arith.constant 3.200000e+01 : f32
    %155 = vector.broadcast %cst_61 : f32 to vector<16x1xf32>
    %156 = arith.divf %154, %155 : vector<16x1xf32>
    %157 = vector.broadcast %149 : vector<16x1xf32> to vector<16x32xf32>
    %158 = arith.subf %141, %157 : vector<16x32xf32>
    %cst_62 = arith.constant 9.99999996E-13 : f32
    %159 = vector.broadcast %cst_62 : f32 to vector<16x1xf32>
    %160 = arith.addf %156, %159 : vector<16x1xf32>
    %161 = math.rsqrt %160 : vector<16x1xf32>
    %162 = vector.broadcast %161 : vector<16x1xf32> to vector<16x32xf32>
    %163 = arith.mulf %158, %162 : vector<16x32xf32>
    %164 = vector.broadcast %143 : vector<1x32xf32> to vector<16x32xf32>
    %165 = arith.mulf %163, %164 : vector<16x32xf32>
    %166 = vector.broadcast %145 : vector<1x32xf32> to vector<16x32xf32>
    %167 = arith.addf %165, %166 : vector<16x32xf32>
    %168 = arith.truncf %167 : vector<16x32xf32> to vector<16x32xbf16>
    %c0_63 = arith.constant 0 : index
    %c0_64 = arith.constant 0 : index
    %c0_65 = arith.constant 0 : index
    %169 = vector.load %arg11[%c0_63, %c0_64, %c0_65] : memref<2x32x64xbf16, #tpu.memory_space<vmem>>, vector<1x32x64xbf16>
    %170 = vector.shape_cast %169 : vector<1x32x64xbf16> to vector<32x64xbf16>
    %cst_66 = arith.constant dense<0.000000e+00> : vector<16x64xf32>
    %171 = tpu.matmul %168, %170, %cst_66 {dimension_numbers = #tpu.dot_dimension_numbers<[1], [0], [0], [1], [0, 0, 1, 1], [], []>} : vector<16x32xbf16>, vector<32x64xbf16>, vector<16x64xf32> -> vector<16x64xf32>
    %c0_67 = arith.constant 0 : index
    %c0_68 = arith.constant 0 : index
    %c0_69 = arith.constant 0 : index
    %172 = vector.load %arg12[%c0_67, %c0_68, %c0_69] : memref<2x1x64xf32, #tpu.memory_space<vmem>>, vector<1x1x64xf32>
    %173 = vector.shape_cast %172 : vector<1x1x64xf32> to vector<1x64xf32>
    %174 = vector.broadcast %173 : vector<1x64xf32> to vector<16x64xf32>
    %175 = arith.addf %171, %174 : vector<16x64xf32>
    %cst_70 = arith.constant 5.000000e-01 : f32
    %176 = vector.broadcast %cst_70 : f32 to vector<16x64xf32>
    %177 = arith.mulf %176, %175 : vector<16x64xf32>
    %cst_71 = arith.constant 4.471500e-02 : f32
    %178 = vector.broadcast %cst_71 : f32 to vector<16x64xf32>
    %179 = arith.mulf %178, %175 : vector<16x64xf32>
    %180 = arith.mulf %179, %175 : vector<16x64xf32>
    %181 = arith.mulf %180, %175 : vector<16x64xf32>
    %182 = arith.addf %175, %181 : vector<16x64xf32>
    %cst_72 = arith.constant 0.797884583 : f32
    %183 = vector.broadcast %cst_72 : f32 to vector<16x64xf32>
    %184 = arith.mulf %183, %182 : vector<16x64xf32>
    %185 = math.tanh %184 : vector<16x64xf32>
    %cst_73 = arith.constant 1.000000e+00 : f32
    %186 = vector.broadcast %cst_73 : f32 to vector<16x64xf32>
    %187 = arith.addf %186, %185 : vector<16x64xf32>
    %188 = arith.mulf %177, %187 : vector<16x64xf32>
    %189 = arith.truncf %188 : vector<16x64xf32> to vector<16x64xbf16>
    %c0_74 = arith.constant 0 : index
    %c0_75 = arith.constant 0 : index
    %c0_76 = arith.constant 0 : index
    %190 = vector.load %arg13[%c0_74, %c0_75, %c0_76] : memref<2x64x32xbf16, #tpu.memory_space<vmem>>, vector<1x64x32xbf16>
    %191 = vector.shape_cast %190 : vector<1x64x32xbf16> to vector<64x32xbf16>
    %cst_77 = arith.constant dense<0.000000e+00> : vector<16x32xf32>
    %192 = tpu.matmul %189, %191, %cst_77 {dimension_numbers = #tpu.dot_dimension_numbers<[1], [0], [0], [1], [0, 0, 1, 1], [], []>} : vector<16x64xbf16>, vector<64x32xbf16>, vector<16x32xf32> -> vector<16x32xf32>
    %c0_78 = arith.constant 0 : index
    %c0_79 = arith.constant 0 : index
    %c0_80 = arith.constant 0 : index
    %193 = vector.load %arg14[%c0_78, %c0_79, %c0_80] : memref<2x1x32xf32, #tpu.memory_space<vmem>>, vector<1x1x32xf32>
    %194 = vector.shape_cast %193 : vector<1x1x32xf32> to vector<1x32xf32>
    %195 = vector.broadcast %194 : vector<1x32xf32> to vector<16x32xf32>
    %196 = arith.addf %192, %195 : vector<16x32xf32>
    %197 = arith.addf %167, %196 : vector<16x32xf32>
    %c0_81 = arith.constant 0 : index
    %c0_82 = arith.constant 0 : index
    %c0_83 = arith.constant 0 : index
    %198 = vector.load %arg15[%c0_81, %c0_82, %c0_83] : memref<2x1x32xf32, #tpu.memory_space<vmem>>, vector<1x1x32xf32>
    %199 = vector.shape_cast %198 : vector<1x1x32xf32> to vector<1x32xf32>
    %c0_84 = arith.constant 0 : index
    %c0_85 = arith.constant 0 : index
    %c0_86 = arith.constant 0 : index
    %200 = vector.load %arg16[%c0_84, %c0_85, %c0_86] : memref<2x1x32xf32, #tpu.memory_space<vmem>>, vector<1x1x32xf32>
    %201 = vector.shape_cast %200 : vector<1x1x32xf32> to vector<1x32xf32>
    %cst_87 = arith.constant dense<0.000000e+00> : vector<16xf32>
    %202 = vector.multi_reduction <add>, %197, %cst_87 [1] : vector<16x32xf32> to vector<16xf32>
    %203 = vector.shape_cast %202 : vector<16xf32> to vector<16x1xf32>
    %cst_88 = arith.constant 3.200000e+01 : f32
    %204 = vector.broadcast %cst_88 : f32 to vector<16x1xf32>
    %205 = arith.divf %203, %204 : vector<16x1xf32>
    %206 = vector.broadcast %205 : vector<16x1xf32> to vector<16x32xf32>
    %207 = arith.subf %197, %206 : vector<16x32xf32>
    %208 = arith.mulf %207, %207 : vector<16x32xf32>
    %cst_89 = arith.constant dense<0.000000e+00> : vector<16xf32>
    %209 = vector.multi_reduction <add>, %208, %cst_89 [1] : vector<16x32xf32> to vector<16xf32>
    %210 = vector.shape_cast %209 : vector<16xf32> to vector<16x1xf32>
    %cst_90 = arith.constant 3.200000e+01 : f32
    %211 = vector.broadcast %cst_90 : f32 to vector<16x1xf32>
    %212 = arith.divf %210, %211 : vector<16x1xf32>
    %213 = vector.broadcast %205 : vector<16x1xf32> to vector<16x32xf32>
    %214 = arith.subf %197, %213 : vector<16x32xf32>
    %cst_91 = arith.constant 9.99999996E-13 : f32
    %215 = vector.broadcast %cst_91 : f32 to vector<16x1xf32>
    %216 = arith.addf %212, %215 : vector<16x1xf32>
    %217 = math.rsqrt %216 : vector<16x1xf32>
    %218 = vector.broadcast %217 : vector<16x1xf32> to vector<16x32xf32>
    %219 = arith.mulf %214, %218 : vector<16x32xf32>
    %220 = vector.broadcast %199 : vector<1x32xf32> to vector<16x32xf32>
    %221 = arith.mulf %219, %220 : vector<16x32xf32>
    %222 = vector.broadcast %201 : vector<1x32xf32> to vector<16x32xf32>
    %223 = arith.addf %221, %222 : vector<16x32xf32>
    %224 = arith.truncf %223 : vector<16x32xf32> to vector<16x32xbf16>
    %c1_92 = arith.constant 1 : index
    %c0_93 = arith.constant 0 : index
    %c0_94 = arith.constant 0 : index
    %225 = vector.load %arg5[%c1_92, %c0_93, %c0_94] : memref<2x32x96xbf16, #tpu.memory_space<vmem>>, vector<1x32x96xbf16>
    %226 = vector.shape_cast %225 : vector<1x32x96xbf16> to vector<32x96xbf16>
    %cst_95 = arith.constant dense<0.000000e+00> : vector<16x96xf32>
    %227 = tpu.matmul %224, %226, %cst_95 {dimension_numbers = #tpu.dot_dimension_numbers<[1], [0], [0], [1], [0, 0, 1, 1], [], []>} : vector<16x32xbf16>, vector<32x96xbf16>, vector<16x96xf32> -> vector<16x96xf32>
    %c1_96 = arith.constant 1 : index
    %c0_97 = arith.constant 0 : index
    %c0_98 = arith.constant 0 : index
    %228 = vector.load %arg6[%c1_96, %c0_97, %c0_98] : memref<2x1x96xf32, #tpu.memory_space<vmem>>, vector<1x1x96xf32>
    %229 = vector.shape_cast %228 : vector<1x1x96xf32> to vector<1x96xf32>
    %230 = vector.broadcast %229 : vector<1x96xf32> to vector<16x96xf32>
    %231 = arith.addf %227, %230 : vector<16x96xf32>
    %232 = vector.extract_strided_slice %231 {offsets = [0, 0], sizes = [16, 32], strides = [1, 1]} : vector<16x96xf32> to vector<16x32xf32>
    %cst_99 = arith.constant 0.353553385 : f32
    %233 = vector.broadcast %cst_99 : f32 to vector<16x32xf32>
    %234 = arith.mulf %232, %233 : vector<16x32xf32>
    %235 = vector.extract_strided_slice %231 {offsets = [0, 32], sizes = [16, 32], strides = [1, 1]} : vector<16x96xf32> to vector<16x32xf32>
    %236 = vector.extract_strided_slice %231 {offsets = [0, 64], sizes = [16, 32], strides = [1, 1]} : vector<16x96xf32> to vector<16x32xf32>
    %237 = arith.truncf %235 : vector<16x32xf32> to vector<16x32xbf16>
    %cst_100 = arith.constant 0.000000e+00 : f32
    %238 = vector.broadcast %cst_100 : f32 to vector<16x32xf32>
    %c0_101 = arith.constant 0 : index
    %c0_102 = arith.constant 0 : index
    %c0_103 = arith.constant 0 : index
    %239 = vector.load %arg2[%c0_101, %c0_102, %c0_103] : memref<4x1x32xf32, #tpu.memory_space<vmem>>, vector<1x1x32xf32>
    %240 = vector.shape_cast %239 : vector<1x1x32xf32> to vector<1x32xf32>
    %241 = vector.broadcast %240 : vector<1x32xf32> to vector<16x32xf32>
    %242 = arith.mulf %234, %241 : vector<16x32xf32>
    %243 = arith.truncf %242 : vector<16x32xf32> to vector<16x32xbf16>
    %244 = vector.broadcast %240 : vector<1x32xf32> to vector<16x32xf32>
    %245 = arith.mulf %236, %244 : vector<16x32xf32>
    %246 = arith.truncf %245 : vector<16x32xf32> to vector<16x32xbf16>
    %cst_104 = arith.constant dense<0.000000e+00> : vector<16x16xf32>
    %247 = tpu.matmul %243, %237, %cst_104 {dimension_numbers = #tpu.dot_dimension_numbers<[1], [1], [0], [0], [0, 0, 1, 0], [], []>} : vector<16x32xbf16>, vector<16x32xbf16>, vector<16x16xf32> -> vector<16x16xf32>
    %248 = arith.addf %247, %25 : vector<16x16xf32>
    %cst_105 = arith.constant dense<0xFF800000> : vector<16xf32>
    %249 = vector.multi_reduction <maximumf>, %248, %cst_105 [1] : vector<16x16xf32> to vector<16xf32>
    %250 = vector.shape_cast %249 : vector<16xf32> to vector<16x1xf32>
    %251 = vector.broadcast %250 : vector<16x1xf32> to vector<16x16xf32>
    %252 = arith.subf %248, %251 : vector<16x16xf32>
    %253 = math.exp %252 : vector<16x16xf32>
    %cst_106 = arith.constant dense<0.000000e+00> : vector<16xf32>
    %254 = vector.multi_reduction <add>, %253, %cst_106 [1] : vector<16x16xf32> to vector<16xf32>
    %255 = vector.shape_cast %254 : vector<16xf32> to vector<16x1xf32>
    %256 = tpu.reciprocal %255 {approx = true} : vector<16x1xf32> -> vector<16x1xf32>
    %257 = vector.broadcast %256 : vector<16x1xf32> to vector<16x16xf32>
    %258 = arith.mulf %253, %257 : vector<16x16xf32>
    %259 = arith.truncf %258 : vector<16x16xf32> to vector<16x16xbf16>
    %cst_107 = arith.constant dense<0.000000e+00> : vector<16x32xf32>
    %260 = tpu.matmul %259, %246, %cst_107 {dimension_numbers = #tpu.dot_dimension_numbers<[1], [0], [0], [1], [0, 0, 1, 1], [], []>} : vector<16x16xbf16>, vector<16x32xbf16>, vector<16x32xf32> -> vector<16x32xf32>
    %261 = arith.addf %238, %260 : vector<16x32xf32>
    %c1_108 = arith.constant 1 : index
    %c0_109 = arith.constant 0 : index
    %c0_110 = arith.constant 0 : index
    %262 = vector.load %arg2[%c1_108, %c0_109, %c0_110] : memref<4x1x32xf32, #tpu.memory_space<vmem>>, vector<1x1x32xf32>
    %263 = vector.shape_cast %262 : vector<1x1x32xf32> to vector<1x32xf32>
    %264 = vector.broadcast %263 : vector<1x32xf32> to vector<16x32xf32>
    %265 = arith.mulf %234, %264 : vector<16x32xf32>
    %266 = arith.truncf %265 : vector<16x32xf32> to vector<16x32xbf16>
    %267 = vector.broadcast %263 : vector<1x32xf32> to vector<16x32xf32>
    %268 = arith.mulf %236, %267 : vector<16x32xf32>
    %269 = arith.truncf %268 : vector<16x32xf32> to vector<16x32xbf16>
    %cst_111 = arith.constant dense<0.000000e+00> : vector<16x16xf32>
    %270 = tpu.matmul %266, %237, %cst_111 {dimension_numbers = #tpu.dot_dimension_numbers<[1], [1], [0], [0], [0, 0, 1, 0], [], []>} : vector<16x32xbf16>, vector<16x32xbf16>, vector<16x16xf32> -> vector<16x16xf32>
    %271 = arith.addf %270, %25 : vector<16x16xf32>
    %cst_112 = arith.constant dense<0xFF800000> : vector<16xf32>
    %272 = vector.multi_reduction <maximumf>, %271, %cst_112 [1] : vector<16x16xf32> to vector<16xf32>
    %273 = vector.shape_cast %272 : vector<16xf32> to vector<16x1xf32>
    %274 = vector.broadcast %273 : vector<16x1xf32> to vector<16x16xf32>
    %275 = arith.subf %271, %274 : vector<16x16xf32>
    %276 = math.exp %275 : vector<16x16xf32>
    %cst_113 = arith.constant dense<0.000000e+00> : vector<16xf32>
    %277 = vector.multi_reduction <add>, %276, %cst_113 [1] : vector<16x16xf32> to vector<16xf32>
    %278 = vector.shape_cast %277 : vector<16xf32> to vector<16x1xf32>
    %279 = tpu.reciprocal %278 {approx = true} : vector<16x1xf32> -> vector<16x1xf32>
    %280 = vector.broadcast %279 : vector<16x1xf32> to vector<16x16xf32>
    %281 = arith.mulf %276, %280 : vector<16x16xf32>
    %282 = arith.truncf %281 : vector<16x16xf32> to vector<16x16xbf16>
    %cst_114 = arith.constant dense<0.000000e+00> : vector<16x32xf32>
    %283 = tpu.matmul %282, %269, %cst_114 {dimension_numbers = #tpu.dot_dimension_numbers<[1], [0], [0], [1], [0, 0, 1, 1], [], []>} : vector<16x16xbf16>, vector<16x32xbf16>, vector<16x32xf32> -> vector<16x32xf32>
    %284 = arith.addf %261, %283 : vector<16x32xf32>
    %c2_115 = arith.constant 2 : index
    %c0_116 = arith.constant 0 : index
    %c0_117 = arith.constant 0 : index
    %285 = vector.load %arg2[%c2_115, %c0_116, %c0_117] : memref<4x1x32xf32, #tpu.memory_space<vmem>>, vector<1x1x32xf32>
    %286 = vector.shape_cast %285 : vector<1x1x32xf32> to vector<1x32xf32>
    %287 = vector.broadcast %286 : vector<1x32xf32> to vector<16x32xf32>
    %288 = arith.mulf %234, %287 : vector<16x32xf32>
    %289 = arith.truncf %288 : vector<16x32xf32> to vector<16x32xbf16>
    %290 = vector.broadcast %286 : vector<1x32xf32> to vector<16x32xf32>
    %291 = arith.mulf %236, %290 : vector<16x32xf32>
    %292 = arith.truncf %291 : vector<16x32xf32> to vector<16x32xbf16>
    %cst_118 = arith.constant dense<0.000000e+00> : vector<16x16xf32>
    %293 = tpu.matmul %289, %237, %cst_118 {dimension_numbers = #tpu.dot_dimension_numbers<[1], [1], [0], [0], [0, 0, 1, 0], [], []>} : vector<16x32xbf16>, vector<16x32xbf16>, vector<16x16xf32> -> vector<16x16xf32>
    %294 = arith.addf %293, %25 : vector<16x16xf32>
    %cst_119 = arith.constant dense<0xFF800000> : vector<16xf32>
    %295 = vector.multi_reduction <maximumf>, %294, %cst_119 [1] : vector<16x16xf32> to vector<16xf32>
    %296 = vector.shape_cast %295 : vector<16xf32> to vector<16x1xf32>
    %297 = vector.broadcast %296 : vector<16x1xf32> to vector<16x16xf32>
    %298 = arith.subf %294, %297 : vector<16x16xf32>
    %299 = math.exp %298 : vector<16x16xf32>
    %cst_120 = arith.constant dense<0.000000e+00> : vector<16xf32>
    %300 = vector.multi_reduction <add>, %299, %cst_120 [1] : vector<16x16xf32> to vector<16xf32>
    %301 = vector.shape_cast %300 : vector<16xf32> to vector<16x1xf32>
    %302 = tpu.reciprocal %301 {approx = true} : vector<16x1xf32> -> vector<16x1xf32>
    %303 = vector.broadcast %302 : vector<16x1xf32> to vector<16x16xf32>
    %304 = arith.mulf %299, %303 : vector<16x16xf32>
    %305 = arith.truncf %304 : vector<16x16xf32> to vector<16x16xbf16>
    %cst_121 = arith.constant dense<0.000000e+00> : vector<16x32xf32>
    %306 = tpu.matmul %305, %292, %cst_121 {dimension_numbers = #tpu.dot_dimension_numbers<[1], [0], [0], [1], [0, 0, 1, 1], [], []>} : vector<16x16xbf16>, vector<16x32xbf16>, vector<16x32xf32> -> vector<16x32xf32>
    %307 = arith.addf %284, %306 : vector<16x32xf32>
    %c3_122 = arith.constant 3 : index
    %c0_123 = arith.constant 0 : index
    %c0_124 = arith.constant 0 : index
    %308 = vector.load %arg2[%c3_122, %c0_123, %c0_124] : memref<4x1x32xf32, #tpu.memory_space<vmem>>, vector<1x1x32xf32>
    %309 = vector.shape_cast %308 : vector<1x1x32xf32> to vector<1x32xf32>
    %310 = vector.broadcast %309 : vector<1x32xf32> to vector<16x32xf32>
    %311 = arith.mulf %234, %310 : vector<16x32xf32>
    %312 = arith.truncf %311 : vector<16x32xf32> to vector<16x32xbf16>
    %313 = vector.broadcast %309 : vector<1x32xf32> to vector<16x32xf32>
    %314 = arith.mulf %236, %313 : vector<16x32xf32>
    %315 = arith.truncf %314 : vector<16x32xf32> to vector<16x32xbf16>
    %cst_125 = arith.constant dense<0.000000e+00> : vector<16x16xf32>
    %316 = tpu.matmul %312, %237, %cst_125 {dimension_numbers = #tpu.dot_dimension_numbers<[1], [1], [0], [0], [0, 0, 1, 0], [], []>} : vector<16x32xbf16>, vector<16x32xbf16>, vector<16x16xf32> -> vector<16x16xf32>
    %317 = arith.addf %316, %25 : vector<16x16xf32>
    %cst_126 = arith.constant dense<0xFF800000> : vector<16xf32>
    %318 = vector.multi_reduction <maximumf>, %317, %cst_126 [1] : vector<16x16xf32> to vector<16xf32>
    %319 = vector.shape_cast %318 : vector<16xf32> to vector<16x1xf32>
    %320 = vector.broadcast %319 : vector<16x1xf32> to vector<16x16xf32>
    %321 = arith.subf %317, %320 : vector<16x16xf32>
    %322 = math.exp %321 : vector<16x16xf32>
    %cst_127 = arith.constant dense<0.000000e+00> : vector<16xf32>
    %323 = vector.multi_reduction <add>, %322, %cst_127 [1] : vector<16x16xf32> to vector<16xf32>
    %324 = vector.shape_cast %323 : vector<16xf32> to vector<16x1xf32>
    %325 = tpu.reciprocal %324 {approx = true} : vector<16x1xf32> -> vector<16x1xf32>
    %326 = vector.broadcast %325 : vector<16x1xf32> to vector<16x16xf32>
    %327 = arith.mulf %322, %326 : vector<16x16xf32>
    %328 = arith.truncf %327 : vector<16x16xf32> to vector<16x16xbf16>
    %cst_128 = arith.constant dense<0.000000e+00> : vector<16x32xf32>
    %329 = tpu.matmul %328, %315, %cst_128 {dimension_numbers = #tpu.dot_dimension_numbers<[1], [0], [0], [1], [0, 0, 1, 1], [], []>} : vector<16x16xbf16>, vector<16x32xbf16>, vector<16x32xf32> -> vector<16x32xf32>
    %330 = arith.addf %307, %329 : vector<16x32xf32>
    %331 = arith.truncf %330 : vector<16x32xf32> to vector<16x32xbf16>
    %c1_129 = arith.constant 1 : index
    %c0_130 = arith.constant 0 : index
    %c0_131 = arith.constant 0 : index
    %332 = vector.load %arg7[%c1_129, %c0_130, %c0_131] : memref<2x32x32xbf16, #tpu.memory_space<vmem>>, vector<1x32x32xbf16>
    %333 = vector.shape_cast %332 : vector<1x32x32xbf16> to vector<32x32xbf16>
    %cst_132 = arith.constant dense<0.000000e+00> : vector<16x32xf32>
    %334 = tpu.matmul %331, %333, %cst_132 {dimension_numbers = #tpu.dot_dimension_numbers<[1], [0], [0], [1], [0, 0, 1, 1], [], []>} : vector<16x32xbf16>, vector<32x32xbf16>, vector<16x32xf32> -> vector<16x32xf32>
    %c1_133 = arith.constant 1 : index
    %c0_134 = arith.constant 0 : index
    %c0_135 = arith.constant 0 : index
    %335 = vector.load %arg8[%c1_133, %c0_134, %c0_135] : memref<2x1x32xf32, #tpu.memory_space<vmem>>, vector<1x1x32xf32>
    %336 = vector.shape_cast %335 : vector<1x1x32xf32> to vector<1x32xf32>
    %337 = vector.broadcast %336 : vector<1x32xf32> to vector<16x32xf32>
    %338 = arith.addf %334, %337 : vector<16x32xf32>
    %339 = arith.addf %223, %338 : vector<16x32xf32>
    %c1_136 = arith.constant 1 : index
    %c0_137 = arith.constant 0 : index
    %c0_138 = arith.constant 0 : index
    %340 = vector.load %arg9[%c1_136, %c0_137, %c0_138] : memref<2x1x32xf32, #tpu.memory_space<vmem>>, vector<1x1x32xf32>
    %341 = vector.shape_cast %340 : vector<1x1x32xf32> to vector<1x32xf32>
    %c1_139 = arith.constant 1 : index
    %c0_140 = arith.constant 0 : index
    %c0_141 = arith.constant 0 : index
    %342 = vector.load %arg10[%c1_139, %c0_140, %c0_141] : memref<2x1x32xf32, #tpu.memory_space<vmem>>, vector<1x1x32xf32>
    %343 = vector.shape_cast %342 : vector<1x1x32xf32> to vector<1x32xf32>
    %cst_142 = arith.constant dense<0.000000e+00> : vector<16xf32>
    %344 = vector.multi_reduction <add>, %339, %cst_142 [1] : vector<16x32xf32> to vector<16xf32>
    %345 = vector.shape_cast %344 : vector<16xf32> to vector<16x1xf32>
    %cst_143 = arith.constant 3.200000e+01 : f32
    %346 = vector.broadcast %cst_143 : f32 to vector<16x1xf32>
    %347 = arith.divf %345, %346 : vector<16x1xf32>
    %348 = vector.broadcast %347 : vector<16x1xf32> to vector<16x32xf32>
    %349 = arith.subf %339, %348 : vector<16x32xf32>
    %350 = arith.mulf %349, %349 : vector<16x32xf32>
    %cst_144 = arith.constant dense<0.000000e+00> : vector<16xf32>
    %351 = vector.multi_reduction <add>, %350, %cst_144 [1] : vector<16x32xf32> to vector<16xf32>
    %352 = vector.shape_cast %351 : vector<16xf32> to vector<16x1xf32>
    %cst_145 = arith.constant 3.200000e+01 : f32
    %353 = vector.broadcast %cst_145 : f32 to vector<16x1xf32>
    %354 = arith.divf %352, %353 : vector<16x1xf32>
    %355 = vector.broadcast %347 : vector<16x1xf32> to vector<16x32xf32>
    %356 = arith.subf %339, %355 : vector<16x32xf32>
    %cst_146 = arith.constant 9.99999996E-13 : f32
    %357 = vector.broadcast %cst_146 : f32 to vector<16x1xf32>
    %358 = arith.addf %354, %357 : vector<16x1xf32>
    %359 = math.rsqrt %358 : vector<16x1xf32>
    %360 = vector.broadcast %359 : vector<16x1xf32> to vector<16x32xf32>
    %361 = arith.mulf %356, %360 : vector<16x32xf32>
    %362 = vector.broadcast %341 : vector<1x32xf32> to vector<16x32xf32>
    %363 = arith.mulf %361, %362 : vector<16x32xf32>
    %364 = vector.broadcast %343 : vector<1x32xf32> to vector<16x32xf32>
    %365 = arith.addf %363, %364 : vector<16x32xf32>
    %366 = arith.truncf %365 : vector<16x32xf32> to vector<16x32xbf16>
    %c1_147 = arith.constant 1 : index
    %c0_148 = arith.constant 0 : index
    %c0_149 = arith.constant 0 : index
    %367 = vector.load %arg11[%c1_147, %c0_148, %c0_149] : memref<2x32x64xbf16, #tpu.memory_space<vmem>>, vector<1x32x64xbf16>
    %368 = vector.shape_cast %367 : vector<1x32x64xbf16> to vector<32x64xbf16>
    %cst_150 = arith.constant dense<0.000000e+00> : vector<16x64xf32>
    %369 = tpu.matmul %366, %368, %cst_150 {dimension_numbers = #tpu.dot_dimension_numbers<[1], [0], [0], [1], [0, 0, 1, 1], [], []>} : vector<16x32xbf16>, vector<32x64xbf16>, vector<16x64xf32> -> vector<16x64xf32>
    %c1_151 = arith.constant 1 : index
    %c0_152 = arith.constant 0 : index
    %c0_153 = arith.constant 0 : index
    %370 = vector.load %arg12[%c1_151, %c0_152, %c0_153] : memref<2x1x64xf32, #tpu.memory_space<vmem>>, vector<1x1x64xf32>
    %371 = vector.shape_cast %370 : vector<1x1x64xf32> to vector<1x64xf32>
    %372 = vector.broadcast %371 : vector<1x64xf32> to vector<16x64xf32>
    %373 = arith.addf %369, %372 : vector<16x64xf32>
    %cst_154 = arith.constant 5.000000e-01 : f32
    %374 = vector.broadcast %cst_154 : f32 to vector<16x64xf32>
    %375 = arith.mulf %374, %373 : vector<16x64xf32>
    %cst_155 = arith.constant 4.471500e-02 : f32
    %376 = vector.broadcast %cst_155 : f32 to vector<16x64xf32>
    %377 = arith.mulf %376, %373 : vector<16x64xf32>
    %378 = arith.mulf %377, %373 : vector<16x64xf32>
    %379 = arith.mulf %378, %373 : vector<16x64xf32>
    %380 = arith.addf %373, %379 : vector<16x64xf32>
    %cst_156 = arith.constant 0.797884583 : f32
    %381 = vector.broadcast %cst_156 : f32 to vector<16x64xf32>
    %382 = arith.mulf %381, %380 : vector<16x64xf32>
    %383 = math.tanh %382 : vector<16x64xf32>
    %cst_157 = arith.constant 1.000000e+00 : f32
    %384 = vector.broadcast %cst_157 : f32 to vector<16x64xf32>
    %385 = arith.addf %384, %383 : vector<16x64xf32>
    %386 = arith.mulf %375, %385 : vector<16x64xf32>
    %387 = arith.truncf %386 : vector<16x64xf32> to vector<16x64xbf16>
    %c1_158 = arith.constant 1 : index
    %c0_159 = arith.constant 0 : index
    %c0_160 = arith.constant 0 : index
    %388 = vector.load %arg13[%c1_158, %c0_159, %c0_160] : memref<2x64x32xbf16, #tpu.memory_space<vmem>>, vector<1x64x32xbf16>
    %389 = vector.shape_cast %388 : vector<1x64x32xbf16> to vector<64x32xbf16>
    %cst_161 = arith.constant dense<0.000000e+00> : vector<16x32xf32>
    %390 = tpu.matmul %387, %389, %cst_161 {dimension_numbers = #tpu.dot_dimension_numbers<[1], [0], [0], [1], [0, 0, 1, 1], [], []>} : vector<16x64xbf16>, vector<64x32xbf16>, vector<16x32xf32> -> vector<16x32xf32>
    %c1_162 = arith.constant 1 : index
    %c0_163 = arith.constant 0 : index
    %c0_164 = arith.constant 0 : index
    %391 = vector.load %arg14[%c1_162, %c0_163, %c0_164] : memref<2x1x32xf32, #tpu.memory_space<vmem>>, vector<1x1x32xf32>
    %392 = vector.shape_cast %391 : vector<1x1x32xf32> to vector<1x32xf32>
    %393 = vector.broadcast %392 : vector<1x32xf32> to vector<16x32xf32>
    %394 = arith.addf %390, %393 : vector<16x32xf32>
    %395 = arith.addf %365, %394 : vector<16x32xf32>
    %c1_165 = arith.constant 1 : index
    %c0_166 = arith.constant 0 : index
    %c0_167 = arith.constant 0 : index
    %396 = vector.load %arg15[%c1_165, %c0_166, %c0_167] : memref<2x1x32xf32, #tpu.memory_space<vmem>>, vector<1x1x32xf32>
    %397 = vector.shape_cast %396 : vector<1x1x32xf32> to vector<1x32xf32>
    %c1_168 = arith.constant 1 : index
    %c0_169 = arith.constant 0 : index
    %c0_170 = arith.constant 0 : index
    %398 = vector.load %arg16[%c1_168, %c0_169, %c0_170] : memref<2x1x32xf32, #tpu.memory_space<vmem>>, vector<1x1x32xf32>
    %399 = vector.shape_cast %398 : vector<1x1x32xf32> to vector<1x32xf32>
    %cst_171 = arith.constant dense<0.000000e+00> : vector<16xf32>
    %400 = vector.multi_reduction <add>, %395, %cst_171 [1] : vector<16x32xf32> to vector<16xf32>
    %401 = vector.shape_cast %400 : vector<16xf32> to vector<16x1xf32>
    %cst_172 = arith.constant 3.200000e+01 : f32
    %402 = vector.broadcast %cst_172 : f32 to vector<16x1xf32>
    %403 = arith.divf %401, %402 : vector<16x1xf32>
    %404 = vector.broadcast %403 : vector<16x1xf32> to vector<16x32xf32>
    %405 = arith.subf %395, %404 : vector<16x32xf32>
    %406 = arith.mulf %405, %405 : vector<16x32xf32>
    %cst_173 = arith.constant dense<0.000000e+00> : vector<16xf32>
    %407 = vector.multi_reduction <add>, %406, %cst_173 [1] : vector<16x32xf32> to vector<16xf32>
    %408 = vector.shape_cast %407 : vector<16xf32> to vector<16x1xf32>
    %cst_174 = arith.constant 3.200000e+01 : f32
    %409 = vector.broadcast %cst_174 : f32 to vector<16x1xf32>
    %410 = arith.divf %408, %409 : vector<16x1xf32>
    %411 = vector.broadcast %403 : vector<16x1xf32> to vector<16x32xf32>
    %412 = arith.subf %395, %411 : vector<16x32xf32>
    %cst_175 = arith.constant 9.99999996E-13 : f32
    %413 = vector.broadcast %cst_175 : f32 to vector<16x1xf32>
    %414 = arith.addf %410, %413 : vector<16x1xf32>
    %415 = math.rsqrt %414 : vector<16x1xf32>
    %416 = vector.broadcast %415 : vector<16x1xf32> to vector<16x32xf32>
    %417 = arith.mulf %412, %416 : vector<16x32xf32>
    %418 = vector.broadcast %397 : vector<1x32xf32> to vector<16x32xf32>
    %419 = arith.mulf %417, %418 : vector<16x32xf32>
    %420 = vector.broadcast %399 : vector<1x32xf32> to vector<16x32xf32>
    %421 = arith.addf %419, %420 : vector<16x32xf32>
    %422 = arith.truncf %421 : vector<16x32xf32> to vector<16x32xbf16>
    %c0_176 = arith.constant 0 : index
    %c0_177 = arith.constant 0 : index
    %423 = vector.load %arg17[%c0_176, %c0_177] : memref<32x256xbf16, #tpu.memory_space<vmem>>, vector<32x256xbf16>
    %cst_178 = arith.constant dense<0.000000e+00> : vector<16x256xf32>
    %424 = tpu.matmul %422, %423, %cst_178 {dimension_numbers = #tpu.dot_dimension_numbers<[1], [0], [0], [1], [0, 0, 1, 1], [], []>} : vector<16x32xbf16>, vector<32x256xbf16>, vector<16x256xf32> -> vector<16x256xf32>
    %c0_179 = arith.constant 0 : index
    %c0_180 = arith.constant 0 : index
    %425 = vector.load %arg18[%c0_179, %c0_180] : memref<1x256xf32, #tpu.memory_space<vmem>>, vector<1x256xf32>
    %426 = vector.broadcast %425 : vector<1x256xf32> to vector<16x256xf32>
    %427 = arith.addf %424, %426 : vector<16x256xf32>
    %cst_181 = arith.constant 0.000000e+00 : f32
    %428 = vector.broadcast %cst_181 : f32 to vector<16x256xf32>
    %429 = arith.maximumf %427, %428 : vector<16x256xf32>
    %430 = arith.truncf %429 : vector<16x256xf32> to vector<16x256xbf16>
    %c0_182 = arith.constant 0 : index
    %c0_183 = arith.constant 0 : index
    %431 = vector.load %arg19[%c0_182, %c0_183] : memref<256x256xbf16, #tpu.memory_space<vmem>>, vector<256x256xbf16>
    %cst_184 = arith.constant dense<0.000000e+00> : vector<16x256xf32>
    %432 = tpu.matmul %430, %431, %cst_184 {dimension_numbers = #tpu.dot_dimension_numbers<[1], [0], [0], [1], [0, 0, 1, 1], [], []>} : vector<16x256xbf16>, vector<256x256xbf16>, vector<16x256xf32> -> vector<16x256xf32>
    %c0_185 = arith.constant 0 : index
    %c0_186 = arith.constant 0 : index
    %433 = vector.load %arg20[%c0_185, %c0_186] : memref<1x256xf32, #tpu.memory_space<vmem>>, vector<1x256xf32>
    %434 = vector.broadcast %433 : vector<1x256xf32> to vector<16x256xf32>
    %435 = arith.addf %432, %434 : vector<16x256xf32>
    %cst_187 = arith.constant 0.000000e+00 : f32
    %436 = vector.broadcast %cst_187 : f32 to vector<16x256xf32>
    %437 = arith.maximumf %435, %436 : vector<16x256xf32>
    %438 = arith.truncf %437 : vector<16x256xf32> to vector<16x256xbf16>
    %c0_188 = arith.constant 0 : index
    %c0_189 = arith.constant 0 : index
    %439 = vector.load %arg21[%c0_188, %c0_189] : memref<256x2xbf16, #tpu.memory_space<vmem>>, vector<256x2xbf16>
    %cst_190 = arith.constant dense<0.000000e+00> : vector<16x2xf32>
    %440 = tpu.matmul %438, %439, %cst_190 {dimension_numbers = #tpu.dot_dimension_numbers<[1], [0], [0], [1], [0, 0, 1, 1], [], []>} : vector<16x256xbf16>, vector<256x2xbf16>, vector<16x2xf32> -> vector<16x2xf32>
    %c0_191 = arith.constant 0 : index
    %c0_192 = arith.constant 0 : index
    %441 = vector.load %arg22[%c0_191, %c0_192] : memref<1x2xf32, #tpu.memory_space<vmem>>, vector<1x2xf32>
    %442 = vector.broadcast %441 : vector<1x2xf32> to vector<16x2xf32>
    %443 = arith.addf %440, %442 : vector<16x2xf32>
    %c0_193 = arith.constant 0 : index
    %c0_194 = arith.constant 0 : index
    %444 = vector.load %arg23[%c0_193, %c0_194] : memref<16x2xf32, #tpu.memory_space<vmem>>, vector<16x2xf32>
    tpu.vector_store %arg23[%c0_193, %c0_194], %443 {strides = array<i32>} : memref<16x2xf32, #tpu.memory_space<vmem>>, vector<16x2xf32>,
    return
  }
}

</mosaic_0001>

<bundles_post_ra>
// kernel: bert_forward.1
= control target key start
LH: loop header
LB: loop body
LE: loop exit
PB: predicated region body
PF: predicated region fallthrough
CT: control target
= control target key end

     0   :  { %vm79_vm0 = vcmask 261120   ;;  %v3109_v15 = vmov 0.0   ;;  %vm3110_vm1 = vmmov 0   ;;  %s3112_s28 = smov 96   ;;  %vm262_vm2 = vcmask 130048   ;;  %s3912_s0 = inlined_call_operand.vmem [shape: f32[16,32], index: 0, kind: input, shape index: {}]   ;;  %s3913_s5 = inlined_call_operand.vmem [shape: bf16[2,32,96], index: 5, kind: input, shape index: {}]   ;;  %s3914_s2 = inlined_call_operand.vmem [shape: f32[4,1,32], index: 2, kind: input, shape index: {}]   ;;  %s3915_s3 = inlined_call_operand.vmem [shape: f32[1,32], index: 3, kind: input, shape index: {}]   ;;  %s3916_s4 = inlined_call_operand.vmem [shape: f32[1,32], index: 4, kind: input, shape index: {}]   ;;  %s3917_s6 = inlined_call_operand.vmem [shape: f32[2,1,96], index: 6, kind: input, shape index: {}]   ;;  %s3918_s1 = inlined_call_operand.vmem [shape: f32[16,16], index: 1, kind: input, shape index: {}]   ;;  %s3919_s7 = inlined_call_operand.vmem [shape: bf16[2,32,32], index: 7, kind: input, shape index: {}]   ;;  %s3920_s8 = inlined_call_operand.vmem [shape: f32[2,1,32], index: 8, kind: input, shape index: {}]   ;;  %s3921_s11 = inlined_call_operand.vmem [shape: bf16[2,32,64], index: 11, kind: input, shape index: {}]   ;;  %s3922_s9 = inlined_call_operand.vmem [shape: f32[2,1,32], index: 9, kind: input, shape index: {}]   ;;  %s3923_s10 = inlined_call_operand.vmem [shape: f32[2,1,32], index: 10, kind: input, shape index: {}]   ;;  %s3924_s13 = inlined_call_operand.vmem [shape: bf16[2,64,32], index: 13, kind: input, shape index: {}]   ;;  %s3925_s12 = inlined_call_operand.vmem [shape: f32[2,1,64], index: 12, kind: input, shape index: {}]   ;;  %s3926_s14 = inlined_call_operand.vmem [shape: f32[2,1,32], index: 14, kind: input, shape index: {}]   ;;  %s3927_s15 = inlined_call_operand.vmem [shape: f32[2,1,32], index: 15, kind: input, shape index: {}]   ;;  %s3928_s16 = inlined_call_operand.vmem [shape: f32[2,1,32], index: 16, kind: input, shape index: {}]   ;;  %s3929_s17 = inlined_call_operand.vmem [shape: bf16[32,256], index: 17, kind: input, shape index: {}]   ;;  %s3930_s19 = inlined_call_operand.vmem [shape: bf16[256,256], index: 19, kind: input, shape index: {}]   ;;  %s3931_s21 = inlined_call_operand.vmem [shape: bf16[256,2], index: 21, kind: input, shape index: {}]   ;;  %s3932_s18 = inlined_call_operand.vmem [shape: f32[1,256], index: 18, kind: input, shape index: {}]   ;;  %s3933_s20 = inlined_call_operand.vmem [shape: f32[1,256], index: 20, kind: input, shape index: {}]   ;;  %s3934_s22 = inlined_call_operand.vmem [shape: f32[1,2], index: 22, kind: input, shape index: {}]   ;;  %s3935_s23 = inlined_call_operand.vmem [shape: f32[16,2], index: 23, kind: output, shape index: {}]  }
   0x1   :  { %3942 = sst [smem:[#allocation2_spill]] %s3912_s0  ;;  %2730 = vmatprep.subr.bf16.mxu0 %v3109_v15  ;;  %2750 = vmatprep.subr.bf16.mxu1 %v3109_v15  ;;  %vm974_vm3 = vcmask 523264   ;;  %vm2490_vm4 = vcmask 15360  }
   0x2   :  { %3943 = sst [smem:[#allocation3_spill]] %s3913_s5  ;;  %s3950_s24 = sld [smem:[#allocation2_spill]]  ;;  %2734 = vmatprep.mubr.msk.bf16.mxu0 %vm3110_vm1, %v3109_v15  ;;  %2752 = vmatprep.mubr.msk.bf16.mxu1 %vm3110_vm1, %v3109_v15 }
   0x3   :  { %3944 = sst [smem:[#allocation4_spill]] %s3914_s2  ;;  %s3951_s26 = sld [smem:[#allocation3_spill]] }
   0x4   :  { %3945 = sst [smem:[#allocation5_spill]] %s3915_s3  ;;  %s3952_s29 = sld [smem:[#allocation4_spill]] }
   0x5   :  { %3946 = sst [smem:[#allocation6_spill]] %s3916_s4  ;;  %s3111_s3 = smov 64  }
   0x6   :  { %3947 = sst [smem:[#allocation7_spill]] %s3917_s6  ;;  %s3953_s25 = sld [smem:[#allocation5_spill]] }
   0x7   :  { %3948 = sst [smem:[#allocation8_spill]] %s3918_s1  ;;  %s3954_s1 = sld [smem:[#allocation6_spill]] }
   0x8   :  { %3949 = sst [smem:[#allocation9_spill]] %s3919_s7  ;;  %v75_v0 = vld [vmem:[%s3950_s24] sm:$0xff]  ;;  %v76_v1 = vld [vmem:[%s3950_s24 + $0x8] sm:$0xff]  ;;  %s3955_s7 = sld [smem:[#allocation7_spill]] }
   0x9   :  { %v80_v2 = vsel %vm79_vm0, %v75_v0, 0.0  ;;  %v83_v3 = vsel %vm79_vm0, %v76_v1, 0.0  ;;  %v2927_v14 = vld [vmem:[%s3951_s26] sm:$0xff]   ;;  %v2928_v16 = vld [vmem:[%s3951_s26 + $0x8] sm:$0xff]   ;;  %s3957_s0 = sld [smem:[#allocation9_spill]] }
   0xa   :  { %81 = vadd.xlane.f32.xlu0 %v80_v2  ;;  %2731 = vmatpush3.bf16.msra.mxu0 %v2927_v14  ;;  %v3261_v17 = vld [vmem:[%s3952_s29 + $0x1] ss:$0 sm:$0xff]  ;;  %v3268_v18 = vld [vmem:[%s3952_s29] ss:$0 sm:$0xff]  ;;  %v3313_v54 = vld [vmem:[%s3952_s29 + $0x2] ss:$0 sm:$0xff] }
   0xb   :  { %2732 = vmatprep.subr.bf16.mxu0 %v3109_v15  ;;  %v3324_v58 = vld [vmem:[%s3952_s29 + $0x3] ss:$0 sm:$0xff]  ;;  %s3956_s29 = sld [smem:[#allocation8_spill]] }
   0xc   :  { %v2497_v27 = vld [vmem:[%s3953_s25] ss:$0 sm:$0xff] }
   0xd   :  { %v2498_v31 = vld [vmem:[%s3954_s1] ss:$0 sm:$0xff] }
   0xe   :  { %84 = vadd.xlane.f32.xlu0 %v83_v3  ;;  %2733 = vmatpush3.bf16.msra.mxu0 %v2928_v16  ;;  %v2499_v36 = vld [vmem:[%s3955_s7] ss:$0 sm:$0xff] }
   0xf   :  { %2738 = vmatprep.subr.bf16.mxu0 %v3109_v15 }
  0x11   :  { %v3337_v62 = vld [vmem:[%s3956_s29] sm:$0xff] }
  0x97   :  { %v82_v4 = vpop.xlane.xlu0 %81 }
  0x98   :  { %v87_v5 = vmul.f32 0.03125, %v82_v4 }
  0x9a   :  { %v89_v6 = vsub.f32 %v75_v0, %v87_v5  ;;  %v3342_v0 = vld [vmem:[%s3956_s29 + $0x8] sm:$0xff] }
  0x9b   :  { %v85_v7 = vpop.xlane.xlu0 %84 }
  0x9c   :  { %v88_v8 = vmul.f32 0.03125, %v85_v7  ;;  %v91_v9 = vmul.f32 %v89_v6, %v89_v6 }
  0x9e   :  { %v90_v10 = vsub.f32 %v76_v1, %v88_v8  ;;  %v93_v11 = vsel %vm79_vm0, %v91_v9, 0.0 }
  0x9f   :  { %94 = vadd.xlane.f32.xlu1 %v93_v11 }
  0xa0   :  { %v92_v12 = vmul.f32 %v90_v10, %v90_v10 }
  0xa2   :  { %v96_v13 = vsel %vm79_vm0, %v92_v12, 0.0 }
  0xa3   :  { %97 = vadd.xlane.f32.xlu1 %v96_v13 }
  0xb4   :  { %297 = vrot.lane.b32.xlu1 %v3261_v17, %s3111_s3 }
  0xb8   :  { %206 = vrot.lane.b32.xlu1 %v3268_v18, %s3111_s3 }
 0x12c   :  { %v95_v19 = vpop.xlane.xlu1 %94 }
 0x12d   :  { %v99_v20 = vmul.f32 0.03125, %v95_v19 }
 0x12f   :  { %v101_v21 = vadd.f32 1e-12, %v99_v20 }
 0x130   :  { %v98_v22 = vpop.xlane.xlu1 %97 }
 0x131   :  { %3017 = vrsqrt.f32 %v101_v21  ;;  %v100_v23 = vmul.f32 0.03125, %v98_v22 }
 0x133   :  { %v102_v24 = vadd.f32 1e-12, %v100_v23 }
 0x135   :  { %3019 = vrsqrt.f32 %v102_v24 }
 0x13b   :  { %v3018_v25 = vpop.eup %3017 }
 0x13c   :  { %v105_v26 = vmul.f32 %v3018_v25, %v89_v6 }
 0x13e   :  { %v113_v30 = vmul.f32 %v2497_v27, %v105_v26 }
 0x13f   :  { %v3020_v28 = vpop.eup %3019 }
 0x140   :  { %v106_v29 = vmul.f32 %v3020_v28, %v90_v10  ;;  %v3278_v33 = vadd.f32 %v2498_v31, %v113_v30 }
 0x142   :  { %v114_v32 = vmul.f32 %v2497_v27, %v106_v29 }
 0x144   :  { %v3280_v34 = vadd.f32 %v2498_v31, %v114_v32 }
 0x146   :  { %v125_v35 = vpack.c.bf16 %v3280_v34, %v3278_v33 }
 0x148   :  { %2735 = vmatmul.mubr.msk.bf16.vlgmr.msra.gmra.mrb[0].mxu0 %vm79_vm0, %v125_v35 }
 0x149   :  { %2740 = vmatprep.mubr.msk.bf16.mxu0 %vm3110_vm1, %v3109_v15 }
 0x21b   :  { %v186_v37 = vpop.f32.mrb[0].mxu0 }
 0x21c   :  { %v2736_v38 = vpop.f32.mrb[1].mxu0  ;;  %v3290_v40 = vadd.f32 %v2499_v36, %v186_v37  ;;  %v3370_v37 = vpop.permute.xlu1 %297 }
 0x21d   :  { %v189_v39 = vpop.f32.mrb[2].mxu0 }
 0x21e   :  { %v3292_v41 = vadd.f32 %v2499_v36, %v189_v39  ;;  %v2737_v42 = vpop.f32.mrb[3].mxu0  ;;  %v193_v46 = vmul.f32 0.35355338, %v3290_v40 }
 0x220   :  { %v195_v43 = vpack.c.bf16 %v3292_v41, %v3290_v40  ;;  %v194_v44 = vmul.f32 0.35355338, %v3292_v41  ;;  %v203_v49 = vmul.f32 %v3268_v18, %v193_v46  ;;  %v294_v52 = vmul.f32 %v3261_v17, %v193_v46  ;;  %v3372_v38 = vpop.permute.xlu1 %206 }
 0x221   :  { %v474_v56 = vmul.f32 %v3313_v54, %v193_v46  ;;  %v608_v60 = vmul.f32 %v3324_v58, %v193_v46 }
 0x222   :  { %213 = vrot.lane.b32.xlu0 %v195_v43, %s3112_s28  ;;  %v204_v48 = vmul.f32 %v3268_v18, %v194_v44  ;;  %v295_v51 = vmul.f32 %v3261_v17, %v194_v44  ;;  %v475_v55 = vmul.f32 %v3313_v54, %v194_v44  ;;  %v609_v59 = vmul.f32 %v3324_v58, %v194_v44 }
 0x224   :  { %v205_v50 = vpack.c.bf16 %v204_v48, %v203_v49  ;;  %v296_v53 = vpack.c.bf16 %v295_v51, %v294_v52  ;;  %v476_v57 = vpack.c.bf16 %v475_v55, %v474_v56  ;;  %v610_v61 = vpack.c.bf16 %v609_v59, %v608_v60 }
 0x294   :  { %v214_v45 = vpop.permute.xlu0 %213 }
 0x295   :  { %v219_v47 = vsel %vm79_vm0, %v214_v45, 0 }
 0x296   :  { %2739 = vmatpush3.bf16.xpose.msra.mxu0 %v219_v47 }
 0x297   :  { %2744 = vmatprep.subr.bf16.mxu0 %v3109_v15 }
 0x29d   :  { %2741 = vmatmul.mubr.msk.bf16.vlgmr.msra.gmra.mrb[4].mxu0 %vm79_vm0, %v205_v50 }
 0x29e   :  { %2745 = vmatpush3.bf16.xpose.msra.mxu0 %v219_v47  ;;  %2746 = vmatprep.mubr.msk.bf16.mxu0 %vm3110_vm1, %v3109_v15 }
 0x29f   :  { %2762 = vmatprep.subr.bf16.mxu0 %v3109_v15 }
 0x2a5   :  { %2747 = vmatmul.mubr.msk.bf16.vlgmr.msra.gmra.mrb[8].mxu0 %vm79_vm0, %v296_v53 }
 0x2a6   :  { %2763 = vmatpush3.bf16.xpose.msra.mxu0 %v219_v47  ;;  %2764 = vmatprep.mubr.msk.bf16.mxu0 %vm3110_vm1, %v3109_v15 }
 0x2a7   :  { %2774 = vmatprep.subr.bf16.mxu0 %v3109_v15 }
 0x2ad   :  { %2765 = vmatmul.mubr.msk.bf16.vlgmr.msra.gmra.mrb[12].mxu0 %vm79_vm0, %v476_v57 }
 0x2ae   :  { %2775 = vmatpush3.bf16.xpose.msra.mxu0 %v219_v47  ;;  %2776 = vmatprep.mubr.msk.bf16.mxu0 %vm3110_vm1, %v3109_v15 }
 0x2af   :  { %2786 = vmatprep.subr.bf16.mxu0 %v3109_v15 }
 0x2b5   :  { %2777 = vmatmul.mubr.msk.bf16.vlgmr.msra.gmra.mrb[16].mxu0 %vm79_vm0, %v610_v61 }
 0x2b6   :  { %2790 = vmatprep.mubr.msk.bf16.mxu0 %vm3110_vm1, %v3109_v15 }
 0x370   :  { %v255_v63 = vpop.f32.mrb[4].mxu0 }
 0x371   :  { %v256_v1 = vadd.f32 %v255_v63, %v3337_v62  ;;  %v2742_v2 = vpop.f32.mrb[5].mxu0 }
 0x372   :  { %v258_v3 = vpop.f32.mrb[6].mxu0 }
 0x373   :  { %v259_v4 = vadd.f32 %v258_v3, %v3342_v0  ;;  %v2743_v5 = vpop.f32.mrb[7].mxu0  ;;  %v263_v6 = vsel %vm262_vm2, %v256_v1, -inf }
 0x374   :  { %264 = vmax.xlane.f32.xlu1 %v263_v6 }
 0x375   :  { %v266_v7 = vsel %vm262_vm2, %v259_v4, -inf }
 0x378   :  { %267 = vmax.xlane.f32.xlu1 %v266_v7  ;;  %v340_v8 = vpop.f32.mrb[8].mxu0 }
 0x379   :  { %v341_v9 = vadd.f32 %v340_v8, %v3337_v62  ;;  %v2748_v10 = vpop.f32.mrb[9].mxu0 }
 0x37a   :  { %v343_v11 = vpop.f32.mrb[10].mxu0 }
 0x37b   :  { %v344_v12 = vadd.f32 %v343_v11, %v3342_v0  ;;  %v2749_v13 = vpop.f32.mrb[11].mxu0  ;;  %v347_v14 = vsel %vm262_vm2, %v341_v9, -inf  ;;  %v301_v11 = vmul.f32 %v3370_v37, %v3292_v41 }
 0x37c   :  { %348 = vmax.xlane.f32.xlu1 %v347_v14  ;;  %v300_v13 = vmul.f32 %v3370_v37, %v3290_v40 }
 0x37d   :  { %v350_v16 = vsel %vm262_vm2, %v344_v12, -inf }
 0x380   :  { %351 = vmax.xlane.f32.xlu1 %v350_v16  ;;  %v520_v19 = vpop.f32.mrb[12].mxu0  ;;  %v302_v16 = vpack.c.bf16 %v301_v11, %v300_v13 }
 0x381   :  { %v3353_v20 = vadd.f32 %v520_v19, %v3337_v62  ;;  %v2766_v21 = vpop.f32.mrb[13].mxu0 }
 0x382   :  { %v523_v22 = vpop.f32.mrb[14].mxu0  ;;  %v210_v21 = vmul.f32 %v3372_v38, %v3292_v41 }
 0x383   :  { %v3356_v23 = vadd.f32 %v523_v22, %v3342_v0  ;;  %v2767_v24 = vpop.f32.mrb[15].mxu0  ;;  %v527_v25 = vsel %vm262_vm2, %v3353_v20, -inf  ;;  %v209_v22 = vmul.f32 %v3372_v38, %v3290_v40 }
 0x384   :  { %528 = vmax.xlane.f32.xlu1 %v527_v25 }
 0x385   :  { %v530_v26 = vsel %vm262_vm2, %v3356_v23, -inf }
 0x388   :  { %531 = vmax.xlane.f32.xlu1 %v530_v26  ;;  %v654_v27 = vpop.f32.mrb[16].mxu0  ;;  %v211_v26 = vpack.c.bf16 %v210_v21, %v209_v22  ;;  %v2930_v21 = vld [vmem:[%s3957_s0 + $0x8] sm:$0xff]  }
 0x389   :  { %v655_v28 = vadd.f32 %v654_v27, %v3337_v62  ;;  %v2778_v29 = vpop.f32.mrb[17].mxu0 }
 0x38a   :  { %v657_v30 = vpop.f32.mrb[18].mxu0 }
 0x38b   :  { %v658_v31 = vadd.f32 %v657_v30, %v3342_v0  ;;  %v2779_v32 = vpop.f32.mrb[19].mxu0  ;;  %v661_v35 = vsel %vm262_vm2, %v655_v28, -inf }
 0x38c   :  { %662 = vmax.xlane.f32.xlu0 %v661_v35 }
 0x38d   :  { %v664_v36 = vsel %vm262_vm2, %v658_v31, -inf }
 0x38e   :  { %665 = vmax.xlane.f32.xlu1 %v664_v36 }
 0x39f   :  { %477 = vrot.lane.b32.xlu1 %v3313_v54, %s3111_s3 }
 0x3a2   :  { %611 = vrot.lane.b32.xlu0 %v3324_v58, %s3111_s3 }
 0x401   :  { %v265_v39 = vpop.xlane.xlu1 %264 }
 0x402   :  { %v269_v42 = vsub.f32 %v256_v1, %v265_v39 }
 0x404   :  { %v271_v43 = vmul.f32 1.442695, %v269_v42 }
 0x405   :  { %v268_v44 = vpop.xlane.xlu1 %267 }
 0x406   :  { %3021 = vpow2.f32 %v271_v43  ;;  %v270_v45 = vsub.f32 %v259_v4, %v268_v44  ;;  %v2929_v44 = vld [vmem:[%s3957_s0] sm:$0xff]  }
 0x407   :  { %2787 = vmatpush3.bf16.msra.mxu0 %v2929_v44 }
 0x408   :  { %v273_v46 = vmul.f32 1.442695, %v270_v45  ;;  %2788 = vmatprep.subr.bf16.mxu0 %v3109_v15 }
 0x409   :  { %v349_v47 = vpop.xlane.xlu1 %348 }
 0x40a   :  { %3023 = vpow2.f32 %v273_v46  ;;  %v353_v48 = vsub.f32 %v341_v9, %v349_v47 }
 0x40b   :  { %2789 = vmatpush3.bf16.msra.mxu0 %v2930_v21 }
 0x40c   :  { %v355_v49 = vmul.f32 1.442695, %v353_v48  ;;  %2794 = vmatprep.subr.bf16.mxu0 %v3109_v15 }
 0x40d   :  { %v352_v50 = vpop.xlane.xlu1 %351 }
 0x40e   :  { %3025 = vpow2.f32 %v355_v49  ;;  %v354_v51 = vsub.f32 %v344_v12, %v352_v50 }
 0x410   :  { %v3374_v52 = vpop.eup %3021  ;;  %v357_v53 = vmul.f32 1.442695, %v354_v51 }
 0x411   :  { %v529_v55 = vpop.xlane.xlu1 %528  ;;  %v275_v56 = vsel %vm262_vm2, %v3374_v52, 0.0 }
 0x412   :  { %3027 = vpow2.f32 %v357_v53  ;;  %276 = vadd.xlane.f32.xlu0 %v275_v56  ;;  %v533_v19 = vsub.f32 %v3353_v20, %v529_v55 }
 0x414   :  { %v3378_v57 = vpop.eup %3023  ;;  %v535_v24 = vmul.f32 1.442695, %v533_v19 }
 0x415   :  { %v278_v59 = vsel %vm262_vm2, %v3378_v57, 0.0  ;;  %v532_v60 = vpop.xlane.xlu1 %531 }
 0x416   :  { %279 = vadd.xlane.f32.xlu1 %v278_v59  ;;  %v534_v25 = vsub.f32 %v3356_v23, %v532_v60 }
 0x418   :  { %v3382_v61 = vpop.eup %3025  ;;  %v537_v27 = vmul.f32 1.442695, %v534_v25 }
 0x419   :  { %v663_v63 = vpop.xlane.xlu0 %662  ;;  %v359_v1 = vsel %vm262_vm2, %v3382_v61, 0.0 }
 0x41a   :  { %v667_v2 = vsub.f32 %v655_v28, %v663_v63  ;;  %360 = vadd.xlane.f32.xlu0 %v359_v1 }
 0x41b   :  { %v666_v3 = vpop.xlane.xlu1 %665 }
 0x41c   :  { %v3386_v4 = vpop.eup %3027  ;;  %v669_v5 = vmul.f32 1.442695, %v667_v2  ;;  %v668_v6 = vsub.f32 %v658_v31, %v666_v3 }
 0x41d   :  { %v362_v7 = vsel %vm262_vm2, %v3386_v4, 0.0  ;;  %v3418_v35 = vpop.permute.xlu0 %611 }
 0x41e   :  { %3029 = vpow2.f32 %v669_v5  ;;  %v671_v8 = vmul.f32 1.442695, %v668_v6  ;;  %363 = vadd.xlane.f32.xlu1 %v362_v7  ;;  %v614_v36 = vmul.f32 %v3418_v35, %v3290_v40  ;;  %v615_v39 = vmul.f32 %v3418_v35, %v3292_v41 }
 0x41f   :  { %v3412_v31 = vpop.permute.xlu1 %477 }
 0x420   :  { %3031 = vpow2.f32 %v671_v8  ;;  %v480_v32 = vmul.f32 %v3412_v31, %v3290_v40  ;;  %v481_v23 = vmul.f32 %v3412_v31, %v3292_v41  ;;  %v616_v43 = vpack.c.bf16 %v615_v39, %v614_v36 }
 0x421   :  { %3033 = vpow2.f32 %v535_v24 }
 0x422   :  { %3035 = vpow2.f32 %v537_v27  ;;  %v482_v42 = vpack.c.bf16 %v481_v23, %v480_v32 }
 0x428   :  { %v3390_v9 = vpop.eup %3029 }
 0x429   :  { %v673_v10 = vsel %vm262_vm2, %v3390_v9, 0.0 }
 0x42a   :  { %v3396_v12 = vpop.eup %3031  ;;  %674 = vadd.xlane.f32.xlu0 %v673_v10 }
 0x42b   :  { %v676_v14 = vsel %vm262_vm2, %v3396_v12, 0.0  ;;  %v3034_v28 = vpop.eup %3033 }
 0x42c   :  { %v539_v29 = vsel %vm262_vm2, %v3034_v28, 0.0  ;;  %v3036_v30 = vpop.eup %3035 }
 0x42d   :  { %v542_v20 = vsel %vm262_vm2, %v3036_v30, 0.0 }
 0x42e   :  { %677 = vadd.xlane.f32.xlu0 %v676_v14 }
 0x42f   :  { %371 = vrot.lane.b32.xlu1 %v302_v16, %s3111_s3 }
 0x444   :  { %419 = vrot.lane.b32.xlu0 %v211_v26, %s3111_s3 }
 0x453   :  { %540 = vadd.xlane.f32.xlu1 %v539_v29 }
 0x457   :  { %543 = vadd.xlane.f32.xlu1 %v542_v20 }
 0x468   :  { %551 = vrot.lane.b32.xlu1 %v482_v42, %s3111_s3 }
 0x46c   :  { %685 = vrot.lane.b32.xlu1 %v616_v43, %s3111_s3 }
 0x49f   :  { %v277_v45 = vpop.xlane.xlu0 %276 }
 0x4a3   :  { %v280_v46 = vpop.xlane.xlu1 %279 }
 0x4a7   :  { %v361_v47 = vpop.xlane.xlu0 %360 }
 0x4a8   :  { %3037 = vrcp.f32 %v361_v47 }
 0x4ab   :  { %v364_v40 = vpop.xlane.xlu1 %363 }
 0x4ac   :  { %3039 = vrcp.f32 %v364_v40 }
 0x4ad   :  { %3041 = vrcp.f32 %v280_v46 }
 0x4ae   :  { %3043 = vrcp.f32 %v277_v45 }
 0x4af   :  { %v372_v41 = vpop.permute.xlu1 %371 }
 0x4b0   :  { %2751 = vmatpush3.bf16.msra.mxu1 %v372_v41 }
 0x4b1   :  { %2756 = vmatprep.subr.bf16.mxu1 %v3109_v15 }
 0x4b2   :  { %v3038_v48 = vpop.eup %3037 }
 0x4b3   :  { %v367_v51 = vmul.f32 %v3038_v48, %v3382_v61 }
 0x4b6   :  { %v3040_v49 = vpop.eup %3039 }
 0x4b7   :  { %v675_v50 = vpop.xlane.xlu0 %674  ;;  %v368_v53 = vmul.f32 %v3040_v49, %v3386_v4  ;;  %v3042_v59 = vpop.eup %3041 }
 0x4b8   :  { %v3044_v63 = vpop.eup %3043  ;;  %v284_v1 = vmul.f32 %v3042_v59, %v3378_v57 }
 0x4b9   :  { %v369_v55 = vpack.c.bf16 %v368_v53, %v367_v51  ;;  %v283_v2 = vmul.f32 %v3044_v63, %v3374_v52 }
 0x4bb   :  { %v678_v56 = vpop.xlane.xlu0 %677  ;;  %2753 = vmatmul.mubr.msk.bf16.vlgmr.msra.gmra.mrb[0].mxu1 %vm262_vm2, %v369_v55  ;;  %v285_v61 = vpack.c.bf16 %v284_v1, %v283_v2  ;;  %v2522_v2 = vld [vmem:[%s3922_s9] ss:$0 sm:$0xff] }
 0x4bc   :  { %2758 = vmatprep.mubr.msk.bf16.mxu1 %vm3110_vm1, %v3109_v15 }
 0x4bf   :  { %v420_v60 = vpop.permute.xlu0 %419 }
 0x4c0   :  { %2757 = vmatpush3.bf16.msra.mxu1 %v420_v60 }
 0x4c1   :  { %2768 = vmatprep.subr.bf16.mxu1 %v3109_v15 }
 0x4c7   :  { %2759 = vmatmul.mubr.msk.bf16.vlgmr.msra.gmra.mrb[0].mxu1 %vm262_vm2, %v285_v61 }
 0x4c8   :  { %2770 = vmatprep.mubr.msk.bf16.mxu1 %vm3110_vm1, %v3109_v15 }
 0x4e0   :  { %v541_v3 = vpop.xlane.xlu1 %540 }
 0x4e1   :  { %3045 = vrcp.f32 %v541_v3 }
 0x4e4   :  { %v544_v4 = vpop.xlane.xlu1 %543 }
 0x4e5   :  { %3047 = vrcp.f32 %v544_v4 }
 0x4e6   :  { %3049 = vrcp.f32 %v678_v56 }
 0x4e7   :  { %3051 = vrcp.f32 %v675_v50  ;;  %v2932_v50 = vld [vmem:[%s3921_s11 + $0x8] sm:$0xff]  }
 0x4e8   :  { %v552_v5 = vpop.permute.xlu1 %551 }
 0x4e9   :  { %2769 = vmatpush3.bf16.msra.mxu1 %v552_v5  ;;  %v2523_v5 = vld [vmem:[%s3923_s10] ss:$0 sm:$0xff] }
 0x4ea   :  { %2780 = vmatprep.subr.bf16.mxu1 %v3109_v15 }
 0x4eb   :  { %v3046_v6 = vpop.eup %3045 }
 0x4ec   :  { %v547_v7 = vmul.f32 %v3046_v6, %v3034_v28  ;;  %v686_v10 = vpop.permute.xlu1 %685 }
 0x4ef   :  { %v3048_v57 = vpop.eup %3047 }
 0x4f0   :  { %v548_v52 = vmul.f32 %v3048_v57, %v3036_v30  ;;  %v3050_v11 = vpop.eup %3049 }
 0x4f1   :  { %v3052_v13 = vpop.eup %3051  ;;  %v682_v14 = vmul.f32 %v3050_v11, %v3396_v12  ;;  %v2935_v11 = vld [vmem:[%s3924_s13 + $0x10] sm:$0xff]  }
 0x4f2   :  { %v549_v8 = vpack.c.bf16 %v548_v52, %v547_v7  ;;  %v681_v16 = vmul.f32 %v3052_v13, %v3390_v9  ;;  %v2518_v9 = vld [vmem:[%s3920_s8] ss:$0 sm:$0xff]  ;;  %v2936_v13 = vld [vmem:[%s3924_s13 + $0x18] sm:$0xff]  }
 0x4f4   :  { %2771 = vmatmul.mubr.msk.bf16.vlgmr.msra.gmra.mrb[0].mxu1 %vm262_vm2, %v549_v8  ;;  %v683_v19 = vpack.c.bf16 %v682_v14, %v681_v16  ;;  %v2933_v8 = vld [vmem:[%s3924_s13] sm:$0xff]  }
 0x4f5   :  { %2781 = vmatpush3.bf16.msra.mxu1 %v686_v10  ;;  %2782 = vmatprep.mubr.msk.bf16.mxu1 %vm3110_vm1, %v3109_v15  ;;  %v2934_v10 = vld [vmem:[%s3924_s13 + $0x8] sm:$0xff]   ;;  %v2524_v14 = vld [vmem:[%s3925_s12] ss:$0 sm:$0xff] }
 0x4f6   :  { %2802 = vmatprep.subr.bf16.mxu1 %v3109_v15 }
 0x500   :  { %2783 = vmatmul.mubr.msk.bf16.vlgmr.msra.gmra.mrb[0].mxu1 %vm262_vm2, %v683_v19 }
 0x501   :  { %2810 = vmatprep.mubr.msk.bf16.mxu1 %vm3110_vm1, %v3109_v15  ;;  %2803 = vmatpush3.bf16.msra.mxu1 %v2933_v8 }
 0x502   :  { %2804 = vmatprep.subr.bf16.mxu1 %v3109_v15 }
 0x505   :  { %2805 = vmatpush3.bf16.msra.mxu1 %v2934_v10 }
 0x506   :  { %2806 = vmatprep.subr.bf16.mxu1 %v3109_v15 }
 0x509   :  { %2807 = vmatpush3.bf16.msra.mxu1 %v2935_v11 }
 0x50a   :  { %2808 = vmatprep.subr.bf16.mxu1 %v3109_v15 }
 0x50d   :  { %2809 = vmatpush3.bf16.msra.mxu1 %v2936_v13 }
 0x50e   :  { %2828 = vmatprep.subr.bf16.mxu1 %v3109_v15 }
 0x5d3   :  { %v725_v22 = vpop.f32.mrb[0].mxu1 }
 0x5d4   :  { %v2784_v24 = vpop.f32.mrb[1].mxu1 }
 0x5d5   :  { %v728_v25 = vpop.f32.mrb[2].mxu1 }
 0x5d6   :  { %v734_v26 = vpack.c.bf16 %v728_v25, %v725_v22  ;;  %v2785_v12 = vpop.f32.mrb[3].mxu1 }
 0x5d8   :  { %2791 = vmatmul.mubr.msk.bf16.vlgmr.msra.gmra.mrb[20].mxu0 %vm79_vm0, %v734_v26 }
 0x5d9   :  { %2798 = vmatprep.mubr.msk.bf16.mxu0 %vm3110_vm1, %v3109_v15 }
 0x6ab   :  { %v795_v27 = vpop.f32.mrb[20].mxu0 }
 0x6ac   :  { %v796_v28 = vadd.f32 %v2518_v9, %v795_v27  ;;  %v2792_v29 = vpop.f32.mrb[21].mxu0 }
 0x6ad   :  { %v798_v30 = vpop.f32.mrb[22].mxu0 }
 0x6ae   :  { %v799_v20 = vadd.f32 %v2518_v9, %v798_v30  ;;  %v2793_v32 = vpop.f32.mrb[23].mxu0  ;;  %v802_v23 = vadd.f32 %v796_v28, %v3278_v33 }
 0x6b0   :  { %v806_v36 = vsel %vm79_vm0, %v802_v23, 0.0  ;;  %v803_v39 = vadd.f32 %v799_v20, %v3280_v34  ;;  %v2931_v34 = vld [vmem:[%s3921_s11] sm:$0xff]  }
 0x6b1   :  { %807 = vadd.xlane.f32.xlu1 %v806_v36  ;;  %2795 = vmatpush3.bf16.msra.mxu0 %v2931_v34 }
 0x6b2   :  { %v809_v42 = vsel %vm79_vm0, %v803_v39, 0.0  ;;  %2796 = vmatprep.subr.bf16.mxu0 %v3109_v15 }
 0x6b3   :  { %810 = vadd.xlane.f32.xlu0 %v809_v42 }
 0x6b5   :  { %2797 = vmatpush3.bf16.msra.mxu0 %v2932_v50 }
 0x6b6   :  { %2814 = vmatprep.subr.bf16.mxu0 %v3109_v15 }
 0x73e   :  { %v808_v43 = vpop.xlane.xlu1 %807 }
 0x73f   :  { %v812_v44 = vmul.f32 0.03125, %v808_v43 }
 0x740   :  { %v811_v45 = vpop.xlane.xlu0 %810 }
 0x741   :  { %v814_v46 = vsub.f32 %v802_v23, %v812_v44  ;;  %v813_v47 = vmul.f32 0.03125, %v811_v45 }
 0x743   :  { %v815_v40 = vsub.f32 %v803_v39, %v813_v47  ;;  %v816_v41 = vmul.f32 %v814_v46, %v814_v46 }
 0x745   :  { %v818_v48 = vsel %vm79_vm0, %v816_v41, 0.0  ;;  %v817_v49 = vmul.f32 %v815_v40, %v815_v40  ;;  %v2528_v41 = vld [vmem:[%s3926_s14] ss:$0 sm:$0xff] }
 0x746   :  { %819 = vadd.xlane.f32.xlu1 %v818_v48 }
 0x747   :  { %v821_v33 = vsel %vm79_vm0, %v817_v49, 0.0 }
 0x74a   :  { %822 = vadd.xlane.f32.xlu1 %v821_v33 }
 0x7d3   :  { %v820_v51 = vpop.xlane.xlu1 %819 }
 0x7d4   :  { %v824_v53 = vmul.f32 0.03125, %v820_v51 }
 0x7d6   :  { %v826_v55 = vadd.f32 1e-12, %v824_v53 }
 0x7d7   :  { %v823_v56 = vpop.xlane.xlu1 %822 }
 0x7d8   :  { %3053 = vrsqrt.f32 %v826_v55  ;;  %v825_v59 = vmul.f32 0.03125, %v823_v56 }
 0x7da   :  { %v827_v60 = vadd.f32 1e-12, %v825_v59 }
 0x7dc   :  { %3055 = vrsqrt.f32 %v827_v60 }
 0x7e2   :  { %v3054_v63 = vpop.eup %3053 }
 0x7e3   :  { %v830_v1 = vmul.f32 %v3054_v63, %v814_v46 }
 0x7e5   :  { %v838_v3 = vmul.f32 %v2522_v2, %v830_v1 }
 0x7e6   :  { %v3056_v61 = vpop.eup %3055 }
 0x7e7   :  { %v831_v4 = vmul.f32 %v3056_v61, %v815_v40  ;;  %v846_v57 = vadd.f32 %v2523_v5, %v838_v3 }
 0x7e9   :  { %v839_v6 = vmul.f32 %v2522_v2, %v831_v4 }
 0x7eb   :  { %v847_v7 = vadd.f32 %v2523_v5, %v839_v6 }
 0x7ed   :  { %v848_v52 = vpack.c.bf16 %v847_v7, %v846_v57 }
 0x7ef   :  { %2799 = vmatmul.mubr.msk.bf16.vlgmr.msra.gmra.mrb[24].mxu0 %vm79_vm0, %v848_v52  ;;  %v2938_v52 = vld [vmem:[%s3951_s26 + $0x18] sm:$0xff]  }
 0x7f0   :  { %2818 = vmatprep.mubr.msk.bf16.mxu0 %vm3110_vm1, %v3109_v15 }
 0x8c2   :  { %v909_v16 = vpop.f32.mrb[24].mxu0 }
 0x8c3   :  { %v910_v19 = vadd.f32 %v2524_v14, %v909_v16  ;;  %v2800_v21 = vpop.f32.mrb[25].mxu0 }
 0x8c4   :  { %v912_v22 = vpop.f32.mrb[26].mxu0  ;;  %v2534_v21 = vld [vmem:[%s3927_s15] ss:$0 sm:$0xff] }
 0x8c5   :  { %v918_v24 = vmul.f32 0.044715, %v910_v19  ;;  %v913_v25 = vadd.f32 %v2524_v14, %v912_v22  ;;  %v2801_v26 = vpop.f32.mrb[27].mxu0  ;;  %v916_v43 = vmul.f32 0.5, %v910_v19 }
 0x8c7   :  { %v920_v12 = vmul.f32 %v918_v24, %v910_v19  ;;  %v919_v9 = vmul.f32 0.044715, %v913_v25  ;;  %v917_v44 = vmul.f32 0.5, %v913_v25 }
 0x8c9   :  { %v922_v27 = vmul.f32 %v920_v12, %v910_v19  ;;  %v921_v28 = vmul.f32 %v919_v9, %v913_v25  ;;  %v2535_v12 = vld [vmem:[%s3928_s16] ss:$0 sm:$0xff] }
 0x8cb   :  { %v924_v29 = vadd.f32 %v922_v27, %v910_v19  ;;  %v923_v30 = vmul.f32 %v921_v28, %v913_v25 }
 0x8cd   :  { %v926_v20 = vmul.f32 0.7978846, %v924_v29  ;;  %v925_v32 = vadd.f32 %v923_v30, %v913_v25  ;;  %v2541_v30 = vld [vmem:[%s3955_s7 + $0x1] ss:$0 sm:$0xff] }
 0x8cf   :  { %3057 = vtanh.f32 %v926_v20  ;;  %v927_v23 = vmul.f32 0.7978846, %v925_v32 }
 0x8d1   :  { %3059 = vtanh.f32 %v927_v23 }
 0x8d9   :  { %v3058_v36 = vpop.eup %3057 }
 0x8da   :  { %v930_v39 = vadd.f32 1.0, %v3058_v36 }
 0x8db   :  { %v3060_v42 = vpop.eup %3059 }
 0x8dc   :  { %v931_v45 = vadd.f32 1.0, %v3060_v42  ;;  %v932_v46 = vmul.f32 %v930_v39, %v916_v43 }
 0x8de   :  { %v933_v47 = vmul.f32 %v931_v45, %v917_v44 }
 0x8e0   :  { %v934_v40 = vpack.c.bf16 %v933_v47, %v932_v46 }
 0x8e2   :  { %2811 = vmatmul.mubr.msk.bf16.vlgmr.msra.gmra.mrb[4].mxu1 %vm974_vm3, %v934_v40 }
 0x8e3   :  { %2830 = vmatprep.mubr.msk.bf16.mxu1 %vm3110_vm1, %v3109_v15 }
 0x9b5   :  { %v1012_v48 = vpop.f32.mrb[4].mxu1 }
 0x9b6   :  { %v1013_v49 = vadd.f32 %v2528_v41, %v1012_v48  ;;  %v2812_v33 = vpop.f32.mrb[5].mxu1 }
 0x9b7   :  { %v1015_v34 = vpop.f32.mrb[6].mxu1 }
 0x9b8   :  { %v1016_v50 = vadd.f32 %v2528_v41, %v1015_v34  ;;  %v2813_v51 = vpop.f32.mrb[7].mxu1  ;;  %v1019_v53 = vadd.f32 %v1013_v49, %v846_v57 }
 0x9ba   :  { %v1023_v55 = vsel %vm79_vm0, %v1019_v53, 0.0  ;;  %v1020_v56 = vadd.f32 %v1016_v50, %v847_v7  ;;  %v2937_v7 = vld [vmem:[%s3951_s26 + $0x10] sm:$0xff]  }
 0x9bb   :  { %1024 = vadd.xlane.f32.xlu1 %v1023_v55  ;;  %2815 = vmatpush3.bf16.msra.mxu0 %v2937_v7 }
 0x9bc   :  { %v1026_v59 = vsel %vm79_vm0, %v1020_v56, 0.0  ;;  %2816 = vmatprep.subr.bf16.mxu0 %v3109_v15 }
 0x9bd   :  { %1027 = vadd.xlane.f32.xlu0 %v1026_v59 }
 0x9bf   :  { %2817 = vmatpush3.bf16.msra.mxu0 %v2938_v52 }
 0x9c0   :  { %2822 = vmatprep.subr.bf16.mxu0 %v3109_v15 }
 0xa48   :  { %v1025_v60 = vpop.xlane.xlu1 %1024 }
 0xa49   :  { %v1029_v63 = vmul.f32 0.03125, %v1025_v60 }
 0xa4a   :  { %v1028_v1 = vpop.xlane.xlu0 %1027 }
 0xa4b   :  { %v1031_v2 = vsub.f32 %v1019_v53, %v1029_v63  ;;  %v1030_v61 = vmul.f32 0.03125, %v1028_v1 }
 0xa4d   :  { %v1032_v3 = vsub.f32 %v1020_v56, %v1030_v61  ;;  %v1033_v4 = vmul.f32 %v1031_v2, %v1031_v2 }
 0xa4f   :  { %v1035_v5 = vsel %vm79_vm0, %v1033_v4, 0.0  ;;  %v1034_v6 = vmul.f32 %v1032_v3, %v1032_v3 }
 0xa50   :  { %1036 = vadd.xlane.f32.xlu1 %v1035_v5 }
 0xa51   :  { %v1038_v57 = vsel %vm79_vm0, %v1034_v6, 0.0 }
 0xa52   :  { %1039 = vadd.xlane.f32.xlu0 %v1038_v57 }
 0xadd   :  { %v1037_v8 = vpop.xlane.xlu1 %1036 }
 0xade   :  { %v1041_v10 = vmul.f32 0.03125, %v1037_v8 }
 0xadf   :  { %v1040_v11 = vpop.xlane.xlu0 %1039 }
 0xae0   :  { %v1043_v13 = vadd.f32 1e-12, %v1041_v10  ;;  %v1042_v14 = vmul.f32 0.03125, %v1040_v11 }
 0xae2   :  { %3061 = vrsqrt.f32 %v1043_v13  ;;  %v1044_v16 = vadd.f32 1e-12, %v1042_v14 }
 0xae4   :  { %3063 = vrsqrt.f32 %v1044_v16 }
 0xaec   :  { %v3062_v19 = vpop.eup %3061 }
 0xaed   :  { %v1047_v22 = vmul.f32 %v3062_v19, %v1031_v2 }
 0xaee   :  { %v3064_v24 = vpop.eup %3063 }
 0xaef   :  { %v1055_v25 = vmul.f32 %v2534_v21, %v1047_v22  ;;  %v1048_v26 = vmul.f32 %v3064_v24, %v1032_v3 }
 0xaf1   :  { %v1056_v9 = vmul.f32 %v2534_v21, %v1048_v26  ;;  %v3528_v27 = vadd.f32 %v2535_v12, %v1055_v25 }
 0xaf3   :  { %v3530_v28 = vadd.f32 %v2535_v12, %v1056_v9 }
 0xaf5   :  { %v1065_v29 = vpack.c.bf16 %v3530_v28, %v3528_v27 }
 0xaf7   :  { %2819 = vmatmul.mubr.msk.bf16.vlgmr.msra.gmra.mrb[28].mxu0 %vm79_vm0, %v1065_v29 }
 0xaf8   :  { %2824 = vmatprep.mubr.msk.bf16.mxu0 %vm3110_vm1, %v3109_v15 }
 0xbca   :  { %v1128_v20 = vpop.f32.mrb[28].mxu0 }
 0xbcb   :  { %v1129_v32 = vadd.f32 %v2541_v30, %v1128_v20  ;;  %v2820_v23 = vpop.f32.mrb[29].mxu0 }
 0xbcc   :  { %v1131_v36 = vpop.f32.mrb[30].mxu0 }
 0xbcd   :  { %v1135_v39 = vmul.f32 0.35355338, %v1129_v32  ;;  %v1132_v42 = vadd.f32 %v2541_v30, %v1131_v36  ;;  %v2821_v43 = vpop.f32.mrb[31].mxu0  ;;  %v3541_v44 = vmul.f32 %v1129_v32, %v3372_v38  ;;  %v3544_v45 = vmul.f32 %v1129_v32, %v3370_v37 }
 0xbce   :  { %v3547_v46 = vmul.f32 %v1129_v32, %v3418_v35  ;;  %v3550_v47 = vmul.f32 %v1129_v32, %v3412_v31 }
 0xbcf   :  { %v1136_v40 = vmul.f32 0.35355338, %v1132_v42  ;;  %v1137_v41 = vpack.c.bf16 %v1132_v42, %v1129_v32  ;;  %v1138_v48 = vmul.f32 %v3268_v18, %v1135_v39  ;;  %v1217_v49 = vmul.f32 %v3261_v17, %v1135_v39 }
 0xbd0   :  { %v1386_v33 = vmul.f32 %v3313_v54, %v1135_v39  ;;  %v1509_v34 = vmul.f32 %v3324_v58, %v1135_v39  ;;  %v3557_v50 = vmul.f32 %v1132_v42, %v3372_v38  ;;  %v3560_v51 = vmul.f32 %v1132_v42, %v3370_v37 }
 0xbd1   :  { %1145 = vrot.lane.b32.xlu1 %v1137_v41, %s3112_s28  ;;  %v1139_v53 = vmul.f32 %v3268_v18, %v1136_v40  ;;  %v1218_v55 = vmul.f32 %v3261_v17, %v1136_v40  ;;  %v1387_v56 = vmul.f32 %v3313_v54, %v1136_v40  ;;  %v1510_v59 = vmul.f32 %v3324_v58, %v1136_v40 }
 0xbd2   :  { %v1143_v60 = vpack.c.bf16 %v3557_v50, %v3541_v44  ;;  %v1222_v38 = vpack.c.bf16 %v3560_v51, %v3544_v45  ;;  %v3572_v63 = vmul.f32 %v1132_v42, %v3418_v35  ;;  %v3575_v37 = vmul.f32 %v1132_v42, %v3412_v31 }
 0xbd3   :  { %v1140_v1 = vpack.c.bf16 %v1139_v53, %v1138_v48  ;;  %v1219_v18 = vpack.c.bf16 %v1218_v55, %v1217_v49  ;;  %v1388_v2 = vpack.c.bf16 %v1387_v56, %v1386_v33  ;;  %v1511_v17 = vpack.c.bf16 %v1510_v59, %v1509_v34 }
 0xbd4   :  { %v1514_v54 = vpack.c.bf16 %v3572_v63, %v3547_v46  ;;  %v1391_v58 = vpack.c.bf16 %v3575_v37, %v3550_v47 }
 0xc43   :  { %v1146_v61 = vpop.permute.xlu1 %1145 }
 0xc44   :  { %v1151_v3 = vsel %vm79_vm0, %v1146_v61, 0 }
 0xc45   :  { %2823 = vmatpush3.bf16.xpose.msra.mxu0 %v1151_v3  ;;  %2829 = vmatpush3.bf16.xpose.msra.mxu1 %v1151_v3 }
 0xc46   :  { %2846 = vmatprep.subr.bf16.mxu1 %v3109_v15  ;;  %2834 = vmatprep.subr.bf16.mxu0 %v3109_v15 }
 0xc4c   :  { %2825 = vmatmul.mubr.msk.bf16.vlgmr.msra.gmra.mrb[32].mxu0 %vm79_vm0, %v1140_v1  ;;  %2831 = vmatmul.mubr.msk.bf16.vlgmr.msra.gmra.mrb[8].mxu1 %vm79_vm0, %v1219_v18 }
 0xc4d   :  { %2847 = vmatpush3.bf16.xpose.msra.mxu1 %v1151_v3  ;;  %2848 = vmatprep.mubr.msk.bf16.mxu1 %vm3110_vm1, %v3109_v15 }
 0xc4e   :  { %2858 = vmatprep.subr.bf16.mxu1 %v3109_v15  ;;  %2836 = vmatprep.mubr.msk.bf16.mxu0 %vm3110_vm1, %v3109_v15 }
 0xc54   :  { %2849 = vmatmul.mubr.msk.bf16.vlgmr.msra.gmra.mrb[12].mxu1 %vm79_vm0, %v1388_v2 }
 0xc55   :  { %2859 = vmatpush3.bf16.xpose.msra.mxu1 %v1151_v3  ;;  %2860 = vmatprep.mubr.msk.bf16.mxu1 %vm3110_vm1, %v3109_v15 }
 0xc56   :  { %2870 = vmatprep.subr.bf16.mxu1 %v3109_v15 }
 0xc5c   :  { %2861 = vmatmul.mubr.msk.bf16.vlgmr.msra.gmra.mrb[16].mxu1 %vm79_vm0, %v1511_v17 }
 0xc5d   :  { %2874 = vmatprep.mubr.msk.bf16.mxu1 %vm3110_vm1, %v3109_v15 }
 0xd1f   :  { %v1187_v31 = vpop.f32.mrb[32].mxu0  ;;  %v1260_v35 = vpop.f32.mrb[8].mxu1 }
 0xd20   :  { %v1261_v4 = vadd.f32 %v1260_v35, %v3337_v62  ;;  %v2826_v5 = vpop.f32.mrb[33].mxu0  ;;  %v2832_v6 = vpop.f32.mrb[9].mxu1  ;;  %v1188_v13 = vadd.f32 %v1187_v31, %v3337_v62 }
 0xd21   :  { %v1190_v57 = vpop.f32.mrb[34].mxu0  ;;  %v1263_v7 = vpop.f32.mrb[10].mxu1 }
 0xd22   :  { %v1264_v52 = vadd.f32 %v1263_v7, %v3342_v0  ;;  %v2827_v8 = vpop.f32.mrb[35].mxu0  ;;  %v2833_v10 = vpop.f32.mrb[11].mxu1  ;;  %v1267_v11 = vsel %vm262_vm2, %v1261_v4, -inf  ;;  %v3604_v22 = vadd.f32 %v1190_v57, %v3342_v0  ;;  %v1194_v26 = vsel %vm262_vm2, %v1188_v13, -inf }
 0xd23   :  { %1268 = vmax.xlane.f32.xlu0 %v1267_v11 }
 0xd24   :  { %v1270_v14 = vsel %vm262_vm2, %v1264_v52, -inf  ;;  %v1197_v29 = vsel %vm262_vm2, %v3604_v22, -inf }
 0xd27   :  { %1271 = vmax.xlane.f32.xlu0 %v1270_v14  ;;  %v1429_v16 = vpop.f32.mrb[12].mxu1 }
 0xd28   :  { %v2850_v19 = vpop.f32.mrb[13].mxu1  ;;  %v1430_v9 = vadd.f32 %v1429_v16, %v3337_v62 }
 0xd29   :  { %v1432_v21 = vpop.f32.mrb[14].mxu1 }
 0xd2a   :  { %v3607_v24 = vadd.f32 %v1432_v21, %v3342_v0  ;;  %v2851_v25 = vpop.f32.mrb[15].mxu1  ;;  %v1436_v39 = vsel %vm262_vm2, %v1430_v9, -inf }
 0xd2b   :  { %1195 = vmax.xlane.f32.xlu0 %v1194_v26 }
 0xd2c   :  { %v1439_v12 = vsel %vm262_vm2, %v3607_v24, -inf }
 0xd2d   :  { %1440 = vmax.xlane.f32.xlu1 %v1439_v12 }
 0xd2f   :  { %1198 = vmax.xlane.f32.xlu0 %v1197_v29  ;;  %v1552_v30 = vpop.f32.mrb[16].mxu1 }
 0xd30   :  { %v2862_v20 = vpop.f32.mrb[17].mxu1  ;;  %v1553_v23 = vadd.f32 %v1552_v30, %v3337_v62 }
 0xd31   :  { %v1555_v32 = vpop.f32.mrb[18].mxu1 }
 0xd32   :  { %v2863_v36 = vpop.f32.mrb[19].mxu1  ;;  %v1556_v42 = vadd.f32 %v1555_v32, %v3342_v0  ;;  %v1559_v43 = vsel %vm262_vm2, %v1553_v23, -inf }
 0xd33   :  { %1437 = vmax.xlane.f32.xlu0 %v1436_v39 }
 0xd34   :  { %v1562_v40 = vsel %vm262_vm2, %v1556_v42, -inf }
 0xd37   :  { %1560 = vmax.xlane.f32.xlu0 %v1559_v43 }
 0xd3b   :  { %1563 = vmax.xlane.f32.xlu0 %v1562_v40 }
 0xd3e   :  { %1339 = vrot.lane.b32.xlu1 %v1143_v60, %s3111_s3 }
 0xdb0   :  { %v1269_v41 = vpop.xlane.xlu0 %1268 }
 0xdb1   :  { %v1273_v48 = vsub.f32 %v1261_v4, %v1269_v41 }
 0xdb3   :  { %v1275_v62 = vmul.f32 1.442695, %v1273_v48 }
 0xdb4   :  { %v1272_v49 = vpop.xlane.xlu0 %1271 }
 0xdb5   :  { %3065 = vpow2.f32 %v1275_v62  ;;  %v1274_v33 = vsub.f32 %v1264_v52, %v1272_v49 }
 0xdb7   :  { %v1277_v0 = vmul.f32 1.442695, %v1274_v33 }
 0xdb8   :  { %v1196_v34 = vpop.xlane.xlu0 %1195 }
 0xdb9   :  { %v1200_v53 = vsub.f32 %v1188_v13, %v1196_v34 }
 0xdba   :  { %v1441_v11 = vpop.xlane.xlu1 %1440 }
 0xdbb   :  { %v1202_v55 = vmul.f32 1.442695, %v1200_v53  ;;  %v1443_v13 = vsub.f32 %v3607_v24, %v1441_v11 }
 0xdbc   :  { %v1199_v56 = vpop.xlane.xlu0 %1198 }
 0xdbd   :  { %3067 = vpow2.f32 %v1202_v55  ;;  %v1201_v52 = vsub.f32 %v3604_v22, %v1199_v56  ;;  %v1446_v16 = vmul.f32 1.442695, %v1443_v13 }
 0xdbe   :  { %3069 = vpow2.f32 %v1277_v0 }
 0xdbf   :  { %v3066_v59 = vpop.eup %3065  ;;  %v1204_v8 = vmul.f32 1.442695, %v1201_v52 }
 0xdc0   :  { %v1438_v1 = vpop.xlane.xlu0 %1437  ;;  %v1279_v18 = vsel %vm262_vm2, %v3066_v59, 0.0 }
 0xdc1   :  { %1280 = vadd.xlane.f32.xlu0 %v1279_v18  ;;  %v1442_v10 = vsub.f32 %v1430_v9, %v1438_v1  ;;  %v1340_v9 = vpop.permute.xlu1 %1339  ;;  %v2940_v18 = vld [vmem:[%s3957_s0 + $0x18] sm:$0xff]  }
 0xdc3   :  { %v1444_v14 = vmul.f32 1.442695, %v1442_v10 }
 0xdc4   :  { %v1561_v44 = vpop.xlane.xlu0 %1560 }
 0xdc5   :  { %v1565_v50 = vsub.f32 %v1553_v23, %v1561_v44 }
 0xdc7   :  { %v3625_v60 = vpop.eup %3067  ;;  %v1567_v2 = vmul.f32 1.442695, %v1565_v50 }
 0xdc8   :  { %v1564_v17 = vpop.xlane.xlu0 %1563  ;;  %v1206_v61 = vsel %vm262_vm2, %v3625_v60, 0.0  ;;  %v3070_v3 = vpop.eup %3069 }
 0xdc9   :  { %3071 = vpow2.f32 %v1567_v2  ;;  %v1566_v31 = vsub.f32 %v1556_v42, %v1564_v17  ;;  %1207 = vadd.xlane.f32.xlu0 %v1206_v61  ;;  %v1282_v4 = vsel %vm262_vm2, %v3070_v3, 0.0  ;;  %v2558_v61 = vld [vmem:[%s3920_s8 + $0x1] ss:$0 sm:$0xff] }
 0xdcb   :  { %v1569_v35 = vmul.f32 1.442695, %v1566_v31 }
 0xdcd   :  { %3073 = vpow2.f32 %v1569_v35  ;;  %1283 = vadd.xlane.f32.xlu0 %v1282_v4 }
 0xdce   :  { %3075 = vpow2.f32 %v1204_v8 }
 0xdcf   :  { %3077 = vpow2.f32 %v1444_v14 }
 0xdd0   :  { %3079 = vpow2.f32 %v1446_v16 }
 0xdd3   :  { %v3630_v5 = vpop.eup %3071 }
 0xdd4   :  { %v1571_v6 = vsel %vm262_vm2, %v3630_v5, 0.0 }
 0xdd5   :  { %1572 = vadd.xlane.f32.xlu1 %v1571_v6 }
 0xdd7   :  { %v3634_v57 = vpop.eup %3073 }
 0xdd8   :  { %v1574_v7 = vsel %vm262_vm2, %v3634_v57, 0.0  ;;  %v3076_v19 = vpop.eup %3075 }
 0xdd9   :  { %1575 = vadd.xlane.f32.xlu1 %v1574_v7  ;;  %v1209_v45 = vsel %vm262_vm2, %v3076_v19, 0.0  ;;  %v3078_v51 = vpop.eup %3077 }
 0xdda   :  { %v1448_v46 = vsel %vm262_vm2, %v3078_v51, 0.0 }
 0xde3   :  { %1291 = vrot.lane.b32.xlu0 %v1222_v38, %s3111_s3  ;;  %v3080_v38 = vpop.eup %3079 }
 0xde4   :  { %v1451_v63 = vsel %vm262_vm2, %v3080_v38, 0.0 }
 0xdea   :  { %1583 = vrot.lane.b32.xlu1 %v1514_v54, %s3111_s3  ;;  %v2939_v54 = vld [vmem:[%s3957_s0 + $0x10] sm:$0xff]  }
 0xdeb   :  { %2871 = vmatpush3.bf16.msra.mxu1 %v2939_v54 }
 0xdec   :  { %2872 = vmatprep.subr.bf16.mxu1 %v3109_v15 }
 0xdef   :  { %2873 = vmatpush3.bf16.msra.mxu1 %v2940_v18 }
 0xdf0   :  { %2878 = vmatprep.subr.bf16.mxu1 %v3109_v15 }
 0xe02   :  { %1210 = vadd.xlane.f32.xlu0 %v1209_v45 }
 0xe06   :  { %1449 = vadd.xlane.f32.xlu0 %v1448_v46 }
 0xe0a   :  { %1452 = vadd.xlane.f32.xlu0 %v1451_v63 }
 0xe20   :  { %1460 = vrot.lane.b32.xlu0 %v1391_v58, %s3111_s3 }
 0xe4e   :  { %v1281_v21 = vpop.xlane.xlu0 %1280 }
 0xe4f   :  { %3081 = vrcp.f32 %v1281_v21 }
 0xe56   :  { %v1208_v22 = vpop.xlane.xlu0 %1207 }
 0xe59   :  { %v3082_v26 = vpop.eup %3081 }
 0xe5a   :  { %v1284_v24 = vpop.xlane.xlu0 %1283  ;;  %v1287_v47 = vmul.f32 %v3082_v26, %v3066_v59 }
 0xe5b   :  { %3083 = vrcp.f32 %v1284_v24 }
 0xe5c   :  { %3085 = vrcp.f32 %v1208_v22 }
 0xe5e   :  { %v1292_v25 = vpop.permute.xlu0 %1291 }
 0xe5f   :  { %2835 = vmatpush3.bf16.msra.mxu0 %v1292_v25 }
 0xe60   :  { %2840 = vmatprep.subr.bf16.mxu0 %v3109_v15 }
 0xe62   :  { %v1573_v39 = vpop.xlane.xlu1 %1572 }
 0xe65   :  { %v3084_v12 = vpop.eup %3083 }
 0xe66   :  { %v1288_v37 = vmul.f32 %v3084_v12, %v3070_v3  ;;  %v3086_v32 = vpop.eup %3085  ;;  %v1576_v41 = vpop.xlane.xlu1 %1575 }
 0xe67   :  { %v1214_v36 = vmul.f32 %v3086_v32, %v3625_v60 }
 0xe68   :  { %v1289_v58 = vpack.c.bf16 %v1288_v37, %v1287_v47  ;;  %v2564_v47 = vld [vmem:[%s3922_s9 + $0x1] ss:$0 sm:$0xff] }
 0xe6a   :  { %2837 = vmatmul.mubr.msk.bf16.vlgmr.msra.gmra.mrb[36].mxu0 %vm262_vm2, %v1289_v58  ;;  %v1584_v53 = vpop.permute.xlu1 %1583 }
 0xe6b   :  { %2841 = vmatpush3.bf16.msra.mxu0 %v1340_v9  ;;  %2842 = vmatprep.mubr.msk.bf16.mxu0 %vm3110_vm1, %v3109_v15 }
 0xe6c   :  { %2852 = vmatprep.subr.bf16.mxu0 %v3109_v15 }
 0xe8f   :  { %v1211_v29 = vpop.xlane.xlu0 %1210 }
 0xe90   :  { %3087 = vrcp.f32 %v1211_v29  ;;  %v2565_v29 = vld [vmem:[%s3923_s10 + $0x1] ss:$0 sm:$0xff] }
 0xe93   :  { %v1450_v30 = vpop.xlane.xlu0 %1449 }
 0xe97   :  { %v1453_v20 = vpop.xlane.xlu0 %1452 }
 0xe98   :  { %3089 = vrcp.f32 %v1453_v20 }
 0xe99   :  { %3091 = vrcp.f32 %v1450_v30 }
 0xe9a   :  { %v3088_v23 = vpop.eup %3087  ;;  %3093 = vrcp.f32 %v1576_v41 }
 0xe9b   :  { %v1215_v42 = vmul.f32 %v3088_v23, %v3076_v19  ;;  %v1461_v40 = vpop.permute.xlu0 %1460  ;;  %3095 = vrcp.f32 %v1573_v39  ;;  %v2944_v39 = vld [vmem:[%s3924_s13 + $0x28] sm:$0xff]  }
 0xe9d   :  { %v1216_v43 = vpack.c.bf16 %v1215_v42, %v1214_v36  ;;  %v2943_v36 = vld [vmem:[%s3924_s13 + $0x20] sm:$0xff]   ;;  %v2945_v42 = vld [vmem:[%s3924_s13 + $0x30] sm:$0xff]  }
 0xe9f   :  { %2843 = vmatmul.mubr.msk.bf16.vlgmr.msra.gmra.mrb[36].mxu0 %vm262_vm2, %v1216_v43  ;;  %v2946_v43 = vld [vmem:[%s3924_s13 + $0x38] sm:$0xff]  }
 0xea0   :  { %2853 = vmatpush3.bf16.msra.mxu0 %v1461_v40  ;;  %2854 = vmatprep.mubr.msk.bf16.mxu0 %vm3110_vm1, %v3109_v15  ;;  %v2571_v40 = vld [vmem:[%s3925_s12 + $0x1] ss:$0 sm:$0xff] }
 0xea1   :  { %2864 = vmatprep.subr.bf16.mxu0 %v3109_v15 }
 0xea2   :  { %v3090_v48 = vpop.eup %3089 }
 0xea3   :  { %v3092_v62 = vpop.eup %3091  ;;  %v1457_v49 = vmul.f32 %v3090_v48, %v3080_v38  ;;  %v2942_v38 = vld [vmem:[%s3921_s11 + $0x18] sm:$0xff]  }
 0xea4   :  { %v1456_v33 = vmul.f32 %v3092_v62, %v3078_v51  ;;  %v3094_v0 = vpop.eup %3093 }
 0xea5   :  { %v3096_v55 = vpop.eup %3095  ;;  %v1580_v56 = vmul.f32 %v3094_v0, %v3634_v57 }
 0xea6   :  { %v1458_v34 = vpack.c.bf16 %v1457_v49, %v1456_v33  ;;  %v1579_v59 = vmul.f32 %v3096_v55, %v3630_v5 }
 0xea8   :  { %v1581_v1 = vpack.c.bf16 %v1580_v56, %v1579_v59 }
 0xeab   :  { %2855 = vmatmul.mubr.msk.bf16.vlgmr.msra.gmra.mrb[36].mxu0 %vm262_vm2, %v1458_v34 }
 0xeac   :  { %2865 = vmatpush3.bf16.msra.mxu0 %v1584_v53  ;;  %2866 = vmatprep.mubr.msk.bf16.mxu0 %vm3110_vm1, %v3109_v15 }
 0xead   :  { %2886 = vmatprep.subr.bf16.mxu0 %v3109_v15 }
 0xeb7   :  { %2867 = vmatmul.mubr.msk.bf16.vlgmr.msra.gmra.mrb[36].mxu0 %vm262_vm2, %v1581_v1 }
 0xeb8   :  { %2894 = vmatprep.mubr.msk.bf16.mxu0 %vm3110_vm1, %v3109_v15  ;;  %2887 = vmatpush3.bf16.msra.mxu0 %v2943_v36  ;;  %v2592_v36 = vld [vmem:[%s3927_s15 + $0x1] ss:$0 sm:$0xff] }
 0xeb9   :  { %2888 = vmatprep.subr.bf16.mxu0 %v3109_v15 }
 0xebc   :  { %2889 = vmatpush3.bf16.msra.mxu0 %v2944_v39 }
 0xebd   :  { %2890 = vmatprep.subr.bf16.mxu0 %v3109_v15 }
 0xec0   :  { %2891 = vmatpush3.bf16.msra.mxu0 %v2945_v42 }
 0xec1   :  { %2892 = vmatprep.subr.bf16.mxu0 %v3109_v15 }
 0xec4   :  { %2893 = vmatpush3.bf16.msra.mxu0 %v2946_v43 }
 0xf8a   :  { %v1623_v44 = vpop.f32.mrb[36].mxu0 }
 0xf8b   :  { %v2868_v50 = vpop.f32.mrb[37].mxu0 }
 0xf8c   :  { %v1626_v60 = vpop.f32.mrb[38].mxu0 }
 0xf8d   :  { %v1632_v2 = vpack.c.bf16 %v1626_v60, %v1623_v44  ;;  %v2869_v17 = vpop.f32.mrb[39].mxu0 }
 0xf8f   :  { %2875 = vmatmul.mubr.msk.bf16.vlgmr.msra.gmra.mrb[20].mxu1 %vm79_vm0, %v1632_v2 }
 0xf90   :  { %2882 = vmatprep.mubr.msk.bf16.mxu1 %vm3110_vm1, %v3109_v15 }
0x1062   :  { %v1695_v3 = vpop.f32.mrb[20].mxu1 }
0x1063   :  { %v1696_v31 = vadd.f32 %v2558_v61, %v1695_v3  ;;  %v2876_v35 = vpop.f32.mrb[21].mxu1 }
0x1064   :  { %v1698_v4 = vpop.f32.mrb[22].mxu1 }
0x1065   :  { %v1699_v5 = vadd.f32 %v2558_v61, %v1698_v4  ;;  %v2877_v6 = vpop.f32.mrb[23].mxu1  ;;  %v1702_v57 = vadd.f32 %v1696_v31, %v3528_v27 }
0x1066   :  { %v2584_v6 = vld [vmem:[%s3926_s14 + $0x1] ss:$0 sm:$0xff] }
0x1067   :  { %v1708_v7 = vsel %vm79_vm0, %v1702_v57, 0.0  ;;  %v1703_v52 = vadd.f32 %v1699_v5, %v3530_v28  ;;  %v2941_v28 = vld [vmem:[%s3921_s11 + $0x10] sm:$0xff]  }
0x1068   :  { %1709 = vadd.xlane.f32.xlu0 %v1708_v7  ;;  %2879 = vmatpush3.bf16.msra.mxu1 %v2941_v28 }
0x1069   :  { %v1711_v8 = vsel %vm79_vm0, %v1703_v52, 0.0  ;;  %2880 = vmatprep.subr.bf16.mxu1 %v3109_v15 }
0x106a   :  { %1712 = vadd.xlane.f32.xlu1 %v1711_v8 }
0x106c   :  { %2881 = vmatpush3.bf16.msra.mxu1 %v2942_v38 }
0x10f5   :  { %v1710_v10 = vpop.xlane.xlu0 %1709 }
0x10f6   :  { %v1714_v11 = vmul.f32 0.03125, %v1710_v10 }
0x10f7   :  { %v1713_v13 = vpop.xlane.xlu1 %1712 }
0x10f8   :  { %v1716_v14 = vsub.f32 %v1702_v57, %v1714_v11  ;;  %v1715_v16 = vmul.f32 0.03125, %v1713_v13 }
0x10fa   :  { %v1717_v19 = vsub.f32 %v1703_v52, %v1715_v16  ;;  %v1718_v45 = vmul.f32 %v1716_v14, %v1716_v14 }
0x10fc   :  { %v1720_v51 = vsel %vm79_vm0, %v1718_v45, 0.0  ;;  %v1719_v46 = vmul.f32 %v1717_v19, %v1717_v19 }
0x10fd   :  { %1721 = vadd.xlane.f32.xlu0 %v1720_v51 }
0x10fe   :  { %v1723_v27 = vsel %vm79_vm0, %v1719_v46, 0.0 }
0x1101   :  { %1724 = vadd.xlane.f32.xlu0 %v1723_v27 }
0x118a   :  { %v1722_v63 = vpop.xlane.xlu0 %1721 }
0x118b   :  { %v1726_v54 = vmul.f32 0.03125, %v1722_v63 }
0x118d   :  { %v1728_v21 = vadd.f32 1e-12, %v1726_v54 }
0x118e   :  { %v1725_v22 = vpop.xlane.xlu0 %1724 }
0x118f   :  { %3097 = vrsqrt.f32 %v1728_v21  ;;  %v1727_v24 = vmul.f32 0.03125, %v1725_v22 }
0x1191   :  { %v1729_v25 = vadd.f32 1e-12, %v1727_v24  ;;  %v2949_v24 = vld [vmem:[%s3929_s17 + $0x4] ss:$8 sps:$4 sm:$0xff]  }
0x1192   :  { %2012 = vmatprep.subr.bf16.mxu1 %v2949_v24  ;;  %v3011_v24 = vld [vmem:[%s3931_s21 + $0x68] sm:$0xff]  }
0x1193   :  { %3099 = vrsqrt.f32 %v1729_v25  ;;  %v2947_v25 = vld [vmem:[%s3929_s17] ss:$8 sps:$4 sm:$0xff]  }
0x1199   :  { %v3098_v26 = vpop.eup %3097 }
0x119a   :  { %v1732_v12 = vmul.f32 %v3098_v26, %v1716_v14  ;;  %v2952_v26 = vld [vmem:[%s3929_s17 + $0x14] ss:$8 sps:$4 sm:$0xff]  }
0x119c   :  { %v1740_v58 = vmul.f32 %v2564_v47, %v1732_v12  ;;  %v3113_v12 = vmov 0  }
0x119d   :  { %v3100_v37 = vpop.eup %3099 }
0x119e   :  { %v1733_v9 = vmul.f32 %v3100_v37, %v1717_v19  ;;  %v1748_v20 = vadd.f32 %v2565_v29, %v1740_v58  ;;  %v2955_v37 = vld [vmem:[%s3930_s19 + $0x4] ss:$8 sps:$4 sm:$0xff]  }
0x11a0   :  { %v1741_v30 = vmul.f32 %v2564_v47, %v1733_v9  ;;  %v2950_v47 = vld [vmem:[%s3929_s17 + $0x10] ss:$8 sps:$4 sm:$0xff]  }
0x11a2   :  { %v1749_v32 = vadd.f32 %v2565_v29, %v1741_v30 }
0x11a4   :  { %v1750_v23 = vpack.c.bf16 %v1749_v32, %v1748_v20 }
0x11a6   :  { %2883 = vmatmul.mubr.msk.bf16.vlgmr.msra.gmra.mrb[24].mxu1 %vm79_vm0, %v1750_v23 }
0x11a7   :  { %2044 = vmatprep.mubr.bf16.mxu1 %v3113_v12  ;;  %2013 = vmatpush1.bf16.msra.mxu1 %v2947_v25  ;;  %v1979_v25 = vlaneseq }
0x11a8   :  { %2014 = vmatprep.subr.bf16.mxu1 %v2952_v26 }
0x11a9   :  { %v1980_v26 = vshrl.u32 %v1979_v25, 7 }
0x11ab   :  { %2015 = vmatpush1.bf16.msra.mxu1 %v2950_v47  ;;  %v1981_v12 = vsub.s32 0, %v1980_v26  ;;  %v1977_v47 = vld [vmem:[%s3932_s18] sm:$0x3] }
0x11ac   :  { %2265 = vmatprep.subr.bf16.mxu1 %v2955_v37  ;;  %v1985_v37 = vsub.s32 1, %v1980_v26 }
0x1279   :  { %v1813_v41 = vpop.f32.mrb[24].mxu1 }
0x127a   :  { %v1814_v48 = vadd.f32 %v2571_v40, %v1813_v41  ;;  %v2884_v62 = vpop.f32.mrb[25].mxu1  ;;  %v2593_v41 = vld [vmem:[%s3928_s16 + $0x1] ss:$0 sm:$0xff] }
0x127b   :  { %v1816_v49 = vpop.f32.mrb[26].mxu1 }
0x127c   :  { %v1822_v33 = vmul.f32 0.044715, %v1814_v48  ;;  %v1817_v34 = vadd.f32 %v2571_v40, %v1816_v49  ;;  %v2885_v53 = vpop.f32.mrb[27].mxu1  ;;  %v1820_v61 = vmul.f32 0.5, %v1814_v48 }
0x127d   :  { %v2958_v53 = vld [vmem:[%s3930_s19 + $0x14] ss:$8 sps:$4 sm:$0xff]  }
0x127e   :  { %v1824_v0 = vmul.f32 %v1822_v33, %v1814_v48  ;;  %v1823_v55 = vmul.f32 0.044715, %v1817_v34  ;;  %v1821_v3 = vmul.f32 0.5, %v1817_v34  ;;  %v2953_v33 = vld [vmem:[%s3930_s19] ss:$8 sps:$4 sm:$0xff]  }
0x1280   :  { %v1826_v56 = vmul.f32 %v1824_v0, %v1814_v48  ;;  %v1825_v59 = vmul.f32 %v1823_v55, %v1817_v34  ;;  %v2956_v0 = vld [vmem:[%s3930_s19 + $0x10] ss:$8 sps:$4 sm:$0xff]   ;;  %v2961_v55 = vld [vmem:[%s3930_s19 + $0x24] ss:$8 sps:$4 sm:$0xff]  }
0x1282   :  { %v1828_v1 = vadd.f32 %v1826_v56, %v1814_v48  ;;  %v1827_v18 = vmul.f32 %v1825_v59, %v1817_v34  ;;  %v2959_v56 = vld [vmem:[%s3930_s19 + $0x20] ss:$8 sps:$4 sm:$0xff]   ;;  %v2964_v59 = vld [vmem:[%s3930_s19 + $0x34] ss:$8 sps:$4 sm:$0xff]  }
0x1284   :  { %v1830_v44 = vmul.f32 0.7978846, %v1828_v1  ;;  %v1829_v15 = vadd.f32 %v1827_v18, %v1817_v34  ;;  %v2962_v1 = vld [vmem:[%s3930_s19 + $0x30] ss:$8 sps:$4 sm:$0xff]   ;;  %v2967_v18 = vld [vmem:[%s3930_s19 + $0x44] ss:$8 sps:$4 sm:$0xff]  }
0x1286   :  { %3101 = vtanh.f32 %v1830_v44  ;;  %v1831_v50 = vmul.f32 0.7978846, %v1829_v15  ;;  %v2965_v44 = vld [vmem:[%s3930_s19 + $0x40] ss:$8 sps:$4 sm:$0xff]   ;;  %v2970_v15 = vld [vmem:[%s3930_s19 + $0x54] ss:$8 sps:$4 sm:$0xff]  }
0x1288   :  { %3103 = vtanh.f32 %v1831_v50  ;;  %v2968_v50 = vld [vmem:[%s3930_s19 + $0x50] ss:$8 sps:$4 sm:$0xff]  }
0x1290   :  { %v3102_v60 = vpop.eup %3101 }
0x1291   :  { %v1834_v2 = vadd.f32 1.0, %v3102_v60  ;;  %v2973_v60 = vld [vmem:[%s3930_s19 + $0x64] ss:$8 sps:$4 sm:$0xff]  }
0x1292   :  { %v3104_v17 = vpop.eup %3103 }
0x1293   :  { %v1835_v31 = vadd.f32 1.0, %v3104_v17  ;;  %v1836_v35 = vmul.f32 %v1834_v2, %v1820_v61  ;;  %v2971_v2 = vld [vmem:[%s3930_s19 + $0x60] ss:$8 sps:$4 sm:$0xff]   ;;  %v2976_v17 = vld [vmem:[%s3930_s19 + $0x74] ss:$8 sps:$4 sm:$0xff]  }
0x1294   :  { %v2974_v61 = vld [vmem:[%s3930_s19 + $0x70] ss:$8 sps:$4 sm:$0xff]  }
0x1295   :  { %v1837_v4 = vmul.f32 %v1835_v31, %v1821_v3  ;;  %v2979_v3 = vld [vmem:[%s3930_s19 + $0x84] ss:$8 sps:$4 sm:$0xff]   ;;  %v2977_v31 = vld [vmem:[%s3930_s19 + $0x80] ss:$8 sps:$4 sm:$0xff]  }
0x1297   :  { %v1838_v5 = vpack.c.bf16 %v1837_v4, %v1836_v35  ;;  %v2982_v35 = vld [vmem:[%s3930_s19 + $0x94] ss:$8 sps:$4 sm:$0xff]   ;;  %v2980_v4 = vld [vmem:[%s3930_s19 + $0x90] ss:$8 sps:$4 sm:$0xff]  }
0x1299   :  { %2895 = vmatmul.mubr.msk.bf16.vlgmr.msra.gmra.mrb[40].mxu0 %vm974_vm3, %v1838_v5  ;;  %v2985_v5 = vld [vmem:[%s3930_s19 + $0xa4] ss:$8 sps:$4 sm:$0xff]  }
0x136c   :  { %v1917_v57 = vpop.f32.mrb[40].mxu0 }
0x136d   :  { %v1918_v7 = vadd.f32 %v2584_v6, %v1917_v57  ;;  %v2896_v52 = vpop.f32.mrb[41].mxu0  ;;  %v2988_v57 = vld [vmem:[%s3930_s19 + $0xb4] ss:$8 sps:$4 sm:$0xff]  }
0x136e   :  { %v1920_v8 = vpop.f32.mrb[42].mxu0  ;;  %v2991_v52 = vld [vmem:[%s3930_s19 + $0xc4] ss:$8 sps:$4 sm:$0xff]  }
0x136f   :  { %v1921_v10 = vadd.f32 %v2584_v6, %v1920_v8  ;;  %v2897_v11 = vpop.f32.mrb[43].mxu0  ;;  %v1924_v13 = vadd.f32 %v1918_v7, %v1748_v20  ;;  %v2983_v6 = vld [vmem:[%s3930_s19 + $0xa0] ss:$8 sps:$4 sm:$0xff]   ;;  %v2986_v7 = vld [vmem:[%s3930_s19 + $0xb0] ss:$8 sps:$4 sm:$0xff]  }
0x1370   :  { %v2989_v8 = vld [vmem:[%s3930_s19 + $0xc0] ss:$8 sps:$4 sm:$0xff]   ;;  %v2992_v11 = vld [vmem:[%s3930_s19 + $0xd0] ss:$8 sps:$4 sm:$0xff]  }
0x1371   :  { %v1930_v14 = vsel %vm79_vm0, %v1924_v13, 0.0  ;;  %v1925_v16 = vadd.f32 %v1921_v10, %v1749_v32  ;;  %v2994_v10 = vld [vmem:[%s3930_s19 + $0xd4] ss:$8 sps:$4 sm:$0xff]  }
0x1372   :  { %1931 = vadd.xlane.f32.xlu0 %v1930_v14  ;;  %v2995_v14 = vld [vmem:[%s3930_s19 + $0xe0] ss:$8 sps:$4 sm:$0xff]  }
0x1373   :  { %v1933_v19 = vsel %vm79_vm0, %v1925_v16, 0.0 }
0x1374   :  { %1934 = vadd.xlane.f32.xlu1 %v1933_v19  ;;  %v3000_v19 = vld [vmem:[%s3930_s19 + $0xf4] ss:$8 sps:$4 sm:$0xff]  }
0x13ff   :  { %v1932_v45 = vpop.xlane.xlu0 %1931 }
0x1400   :  { %v1936_v51 = vmul.f32 0.03125, %v1932_v45  ;;  %v3001_v45 = vld [vmem:[%s3931_s21 + $0x40] sm:$0xff]  }
0x1401   :  { %v1935_v46 = vpop.xlane.xlu1 %1934  ;;  %2708 = vmatprep.subr.bf16.mxu0 %v3001_v45 }
0x1402   :  { %v1938_v27 = vsub.f32 %v1924_v13, %v1936_v51  ;;  %v1937_v28 = vmul.f32 0.03125, %v1935_v46  ;;  %v2997_v13 = vld [vmem:[%s3930_s19 + $0xe4] ss:$8 sps:$4 sm:$0xff]  }
0x1403   :  { %v3002_v51 = vld [vmem:[%s3931_s21] sm:$0xff]   ;;  %v3003_v46 = vld [vmem:[%s3931_s21 + $0x48] sm:$0xff]  }
0x1404   :  { %v1939_v38 = vsub.f32 %v1925_v16, %v1937_v28  ;;  %v1940_v63 = vmul.f32 %v1938_v27, %v1938_v27  ;;  %v2998_v16 = vld [vmem:[%s3930_s19 + $0xf0] ss:$8 sps:$4 sm:$0xff]   ;;  %2709 = vmatpush3.bf16.msra.mxu0 %v3002_v51 }
0x1405   :  { %2710 = vmatprep.subr.bf16.mxu0 %v3003_v46  ;;  %v3005_v28 = vld [vmem:[%s3931_s21 + $0x50] sm:$0xff]  }
0x1406   :  { %v1942_v54 = vsel %vm79_vm0, %v1940_v63, 0.0  ;;  %v1941_v21 = vmul.f32 %v1939_v38, %v1939_v38  ;;  %v3007_v63 = vld [vmem:[%s3931_s21 + $0x58] sm:$0xff]  }
0x1407   :  { %1943 = vadd.xlane.f32.xlu0 %v1942_v54  ;;  %v3008_v54 = vld [vmem:[%s3931_s21 + $0x18] sm:$0xff]  }
0x1408   :  { %v1945_v22 = vsel %vm79_vm0, %v1941_v21, 0.0  ;;  %v3009_v21 = vld [vmem:[%s3931_s21 + $0x60] sm:$0xff]  }
0x1409   :  { %1946 = vadd.xlane.f32.xlu1 %v1945_v22  ;;  %v3010_v22 = vld [vmem:[%s3931_s21 + $0x20] sm:$0xff]  }
0x1494   :  { %v1944_v58 = vpop.xlane.xlu0 %1943 }
0x1495   :  { %v1948_v9 = vmul.f32 0.03125, %v1944_v58  ;;  %v1982_v58 = vrot.slane %v1977_v47, %v1981_v12 }
0x1496   :  { %v1947_v29 = vpop.xlane.xlu1 %1946 }
0x1497   :  { %v1950_v30 = vadd.f32 1e-12, %v1948_v9  ;;  %v1949_v20 = vmul.f32 0.03125, %v1947_v29  ;;  %v1986_v9 = vrot.slane %v1977_v47, %v1985_v37 }
0x1499   :  { %3105 = vrsqrt.f32 %v1950_v30  ;;  %v1951_v32 = vadd.f32 1e-12, %v1949_v20 }
0x149b   :  { %3107 = vrsqrt.f32 %v1951_v32 }
0x14a3   :  { %v3106_v23 = vpop.eup %3105 }
0x14a4   :  { %v1954_v39 = vmul.f32 %v3106_v23, %v1938_v27  ;;  %v3004_v27 = vld [vmem:[%s3931_s21 + $0x8] sm:$0xff]  }
0x14a5   :  { %v3108_v42 = vpop.eup %3107  ;;  %2711 = vmatpush3.bf16.msra.mxu0 %v3004_v27 }
0x14a6   :  { %v1962_v43 = vmul.f32 %v2592_v36, %v1954_v39  ;;  %v1955_v40 = vmul.f32 %v3108_v42, %v1939_v38  ;;  %v3006_v38 = vld [vmem:[%s3931_s21 + $0x10] sm:$0xff]   ;;  %2712 = vmatprep.subr.bf16.mxu0 %v3005_v28 }
0x14a8   :  { %v1963_v48 = vmul.f32 %v2592_v36, %v1955_v40  ;;  %v1970_v62 = vadd.f32 %v2593_v41, %v1962_v43 }
0x14a9   :  { %2713 = vmatpush3.bf16.msra.mxu0 %v3006_v38 }
0x14aa   :  { %v1971_v49 = vadd.f32 %v2593_v41, %v1963_v48  ;;  %2714 = vmatprep.subr.bf16.mxu0 %v3007_v63 }
0x14ac   :  { %v1972_v34 = vpack.c.bf16 %v1971_v49, %v1970_v62 }
0x14ad   :  { %2715 = vmatpush3.bf16.msra.mxu0 %v3008_v54 }
0x14ae   :  { %2598 = vmatmul.mubr.msk.bf16.vlgmr.msra.gmra.mrb[28].mxu1 %vm79_vm0, %v1972_v34  ;;  %2716 = vmatprep.subr.bf16.mxu0 %v3009_v21  ;;  %v3013_v34 = vld [vmem:[%s3931_s21 + $0x70] sm:$0xff]  }
0x14af   :  { %2266 = vmatpush1.bf16.msra.mxu1 %v2953_v33  ;;  %v3012_v33 = vld [vmem:[%s3931_s21 + $0x28] sm:$0xff]  }
0x14b0   :  { %2267 = vmatprep.subr.bf16.mxu1 %v2958_v53  ;;  %v3014_v53 = vld [vmem:[%s3931_s21 + $0x30] sm:$0xff]  }
0x14b1   :  { %2717 = vmatpush3.bf16.msra.mxu0 %v3010_v22 }
0x14b2   :  { %2718 = vmatprep.subr.bf16.mxu0 %v3011_v24 }
0x14b3   :  { %2268 = vmatpush1.bf16.msra.mxu1 %v2956_v0  ;;  %v3015_v0 = vld [vmem:[%s3931_s21 + $0x78] sm:$0xff]  }
0x14b4   :  { %2269 = vmatprep.subr.bf16.mxu1 %v2961_v55  ;;  %v3016_v55 = vld [vmem:[%s3931_s21 + $0x38] sm:$0xff]  }
0x14b5   :  { %2719 = vmatpush3.bf16.msra.mxu0 %v3012_v33 }
0x14b6   :  { %2720 = vmatprep.subr.bf16.mxu0 %v3013_v34 }
0x14b7   :  { %2270 = vmatpush1.bf16.msra.mxu1 %v2959_v56  ;;  %v2093_v56 = vld [vmem:[%s3933_s20] sm:$0x3] }
0x14b8   :  { %2271 = vmatprep.subr.bf16.mxu1 %v2964_v59  ;;  %v2098_v59 = vrot.slane %v2093_v56, %v1981_v12 }
0x14b9   :  { %2721 = vmatpush3.bf16.msra.mxu0 %v3014_v53 }
0x14ba   :  { %2722 = vmatprep.subr.bf16.mxu0 %v3015_v0 }
0x14bb   :  { %2272 = vmatpush1.bf16.msra.mxu1 %v2962_v1  ;;  %v2102_v1 = vrot.slane %v2093_v56, %v1985_v37 }
0x14bc   :  { %2273 = vmatprep.subr.bf16.mxu1 %v2967_v18 }
0x14bd   :  { %2723 = vmatpush3.bf16.msra.mxu0 %v3016_v55 }
0x14bf   :  { %2274 = vmatpush1.bf16.msra.mxu1 %v2965_v44 }
0x14c0   :  { %2275 = vmatprep.subr.bf16.mxu1 %v2970_v15 }
0x14c3   :  { %2276 = vmatpush1.bf16.msra.mxu1 %v2968_v50 }
0x14c4   :  { %2277 = vmatprep.subr.bf16.mxu1 %v2973_v60 }
0x14c7   :  { %2278 = vmatpush1.bf16.msra.mxu1 %v2971_v2 }
0x14c8   :  { %2279 = vmatprep.subr.bf16.mxu1 %v2976_v17 }
0x14cb   :  { %2280 = vmatpush1.bf16.msra.mxu1 %v2974_v61 }
0x14cc   :  { %2281 = vmatprep.subr.bf16.mxu1 %v2979_v3 }
0x14cf   :  { %2282 = vmatpush1.bf16.msra.mxu1 %v2977_v31 }
0x14d0   :  { %2283 = vmatprep.subr.bf16.mxu1 %v2982_v35 }
0x14d3   :  { %2284 = vmatpush1.bf16.msra.mxu1 %v2980_v4 }
0x14d4   :  { %2285 = vmatprep.subr.bf16.mxu1 %v2985_v5 }
0x14d7   :  { %2286 = vmatpush1.bf16.msra.mxu1 %v2983_v6 }
0x14d8   :  { %2287 = vmatprep.subr.bf16.mxu1 %v2988_v57 }
0x14db   :  { %2288 = vmatpush1.bf16.msra.mxu1 %v2986_v7  ;;  %v2631_v7 = vld [vmem:[%s3934_s22] ss:$0 sm:$0xff] }
0x14dc   :  { %2289 = vmatprep.subr.bf16.mxu1 %v2991_v52 }
0x14df   :  { %2290 = vmatpush1.bf16.msra.mxu1 %v2989_v8 }
0x14e0   :  { %2291 = vmatprep.subr.bf16.mxu1 %v2994_v10 }
0x14e3   :  { %2292 = vmatpush1.bf16.msra.mxu1 %v2992_v11 }
0x14e4   :  { %2293 = vmatprep.subr.bf16.mxu1 %v2997_v13 }
0x14e7   :  { %2294 = vmatpush1.bf16.msra.mxu1 %v2995_v14 }
0x14e8   :  { %2295 = vmatprep.subr.bf16.mxu1 %v3000_v19 }
0x14eb   :  { %2296 = vmatpush1.bf16.msra.mxu1 %v2998_v16 }
0x1581   :  { %v2046_v29 = vpop.f32.mrb[28].mxu1 }
0x1582   :  { %v2047_v30 = vadd.f32 %v2046_v29, %v1982_v58  ;;  %v2048_v20 = vpop.f32.mrb[29].mxu1 }
0x1583   :  { %v2049_v32 = vadd.f32 %v2048_v20, %v1986_v9  ;;  %v2050_v23 = vpop.f32.mrb[30].mxu1 }
0x1584   :  { %v2051_v36 = vadd.f32 %v2050_v23, %v1982_v58  ;;  %v2052_v39 = vpop.f32.mrb[31].mxu1  ;;  %v2055_v43 = vmax.f32 %v2047_v30, 0.0 }
0x1585   :  { %v2053_v42 = vadd.f32 %v2052_v39, %v1986_v9  ;;  %v2056_v41 = vmax.f32 %v2049_v32, 0.0 }
0x1586   :  { %v2057_v40 = vmax.f32 %v2051_v36, 0.0 }
0x1587   :  { %v2058_v48 = vmax.f32 %v2053_v42, 0.0 }
0x1588   :  { %v2059_v62 = vpack.c.bf16 %v2057_v40, %v2055_v43 }
0x1589   :  { %v2060_v49 = vpack.c.bf16 %v2058_v48, %v2056_v41 }
0x158b   :  { %2297 = vmatprep.mubr.bf16.mxu1 %v2060_v49 }
0x158c   :  { %2298 = vmatmul.mubr.bf16.vlgmr.msra.gmra.mrb[32].mxu1 %v2059_v62 }
0x165f   :  { %v2299_v18 = vpop.f32.mrb[32].mxu1 }
0x1660   :  { %v2300_v44 = vadd.f32 %v2299_v18, %v2098_v59  ;;  %v2301_v15 = vpop.f32.mrb[33].mxu1 }
0x1661   :  { %v2302_v50 = vadd.f32 %v2301_v15, %v2102_v1  ;;  %v2303_v60 = vpop.f32.mrb[34].mxu1 }
0x1662   :  { %v2304_v2 = vadd.f32 %v2303_v60, %v2098_v59  ;;  %v2305_v17 = vpop.f32.mrb[35].mxu1  ;;  %v2308_v3 = vmax.f32 %v2300_v44, 0.0 }
0x1663   :  { %v2306_v61 = vadd.f32 %v2305_v17, %v2102_v1  ;;  %v2309_v35 = vmax.f32 %v2302_v50, 0.0 }
0x1664   :  { %v2310_v31 = vmax.f32 %v2304_v2, 0.0 }
0x1665   :  { %v2311_v4 = vmax.f32 %v2306_v61, 0.0 }
0x1666   :  { %v2312_v5 = vpack.c.bf16 %v2310_v31, %v2308_v3 }
0x1667   :  { %v2313_v6 = vpack.c.bf16 %v2311_v4, %v2309_v35 }
0x1669   :  { %2481 = vmatprep.mubr.bf16.mxu0 %v2313_v6 }
0x166a   :  { %2482 = vmatmul.mubr.bf16.vlgmr.msra.gmra.mrb[44].mxu0 %v2312_v5 }
0x173d   :  { %v2724_v57 = vpop.f32.mrb[44].mxu0 }
0x173e   :  { %v2725_v52 = vpop.f32.mrb[45].mxu0 }
0x173f   :  { %v2726_v8 = vadd.f32 %v2725_v52, %v2724_v57  ;;  %v2727_v10 = vpop.f32.mrb[46].mxu0 }
0x1740   :  { %v2728_v11 = vpop.f32.mrb[47].mxu0 }
0x1741   :  { %v2484_v13 = vadd.f32 %v2726_v8, %v2631_v7  ;;  %v2729_v14 = vadd.f32 %v2728_v11, %v2727_v10 }
0x1743   :  { %2491 = vst.msk [vmem:[%s3935_s23] sm:$0xff] %vm2490_vm4, %v2484_v13  ;;  %v2487_v16 = vadd.f32 %v2729_v14, %v2631_v7 }
0x1745   :  { %2492 = vst.msk [vmem:[%s3935_s23 + $0x8] sm:$0xff] %vm2490_vm4, %v2487_v16 }

</bundles_post_ra>
